<compile_context>
chip_gen: v7x
topology: tpu7x:2x2x1
jax: 0.10.0
libtpu: 0.0.40
codegen_flags: <defaults>
</compile_context>

<pallas_src>
import math
import numpy as np
import jax
import jax.numpy as jnp
from jax.experimental import pallas as pl
from jax.experimental.pallas import tpu as pltpu

# ---------------- model hyper-parameters (small, consistent with the module) ----
NUM_PATCHES = 8      # L
BATCH       = 2      # N
EMBED_DIM   = 32     # E
NUM_HEADS   = 4
FF_DIM      = 64
NUM_LAYERS  = 2
OUT_DIM     = 256
HEAD_DIM    = EMBED_DIM // NUM_HEADS
LN_EPS      = 1e-5


# ---------------- shared helper (pure jnp; used in kernel and reference) --------
def _layer_norm(x, gamma, beta):
    mu  = jnp.mean(x, axis=-1, keepdims=True)
    var = jnp.mean((x - mu) ** 2, axis=-1, keepdims=True)     # biased var (PyTorch)
    return (x - mu) * jax.lax.rsqrt(var + LN_EPS) * gamma + beta


# ---------------- the Pallas kernel ---------------------------------------------
def encoder_kernel(x_ref, pos_ref,
                   w_in_ref, b_in_ref, w_o_ref, b_o_ref,
                   g1_ref, bt1_ref,
                   w_f1_ref, b_f1_ref, w_f2_ref, b_f2_ref,
                   g2_ref, bt2_ref,
                   w_out_ref, b_out_ref,
                   o_ref):
    B = x_ref.shape[0]                        # static batch-block (1 on v7x, N else)
    L, E, H, D = NUM_PATCHES, EMBED_DIM, NUM_HEADS, HEAD_DIM
    T = B * L

    # add positional encoding, flatten all tokens of the block to (B*L, E)
    # so every dense matmul runs with full sublane occupancy.
    x = (x_ref[...] + pos_ref[...][None]).reshape(T, E)

    for l in range(NUM_LAYERS):                                          # static unroll
        # ---- multi-head self-attention (weights pre-transposed, no `.T`) -------
        qkv = jnp.dot(x, w_in_ref[l], preferred_element_type=jnp.float32) + b_in_ref[l]
        qkv = qkv.reshape(B, L, 3 * E)                                   # (B, L, 3E)

        def _split_heads(base):
            # (B, L, 3E) -> (H*B, L, D); leading index = h*B + b
            return jnp.concatenate(
                [qkv[:, :, base + h * D: base + (h + 1) * D] for h in range(H)],
                axis=0)

        q = _split_heads(0)          # 1/sqrt(head_dim) already folded into Wq on host
        k = _split_heads(E)
        v = _split_heads(2 * E)

        # one batched score matmul + ONE softmax for all heads/batches
        s = jnp.einsum('bld,bmd->blm', q, k, preferred_element_type=jnp.float32)
        s = s - jnp.max(s, axis=-1, keepdims=True)
        p = jnp.exp(s)
        p = p * pl.reciprocal(jnp.sum(p, axis=-1, keepdims=True), approx=True)
        o = jnp.einsum('blm,bmd->bld', p, v, preferred_element_type=jnp.float32)

        # merge heads: (H*B, L, D) -> (B, L, E) -> (B*L, E)
        o = jnp.concatenate([o[h * B:(h + 1) * B] for h in range(H)], axis=-1)
        o = o.reshape(T, E)

        attn = jnp.dot(o, w_o_ref[l], preferred_element_type=jnp.float32) + b_o_ref[l]
        x = _layer_norm(x + attn, g1_ref[l], bt1_ref[l])

        # ---- feed-forward -------------------------------------------------------
        hdn = jnp.dot(x, w_f1_ref[l], preferred_element_type=jnp.float32) + b_f1_ref[l]
        hdn = jnp.maximum(hdn, 0.0)
        ff = jnp.dot(hdn, w_f2_ref[l], preferred_element_type=jnp.float32) + b_f2_ref[l]
        x = _layer_norm(x + ff, g2_ref[l], bt2_ref[l])

    # lane-dense output projection: (B*L, E) @ (E, 256)
    out = jnp.dot(x, w_out_ref[...], preferred_element_type=jnp.float32) + b_out_ref[...]
    o_ref[...] = out.reshape(B, L, OUT_DIM)


# ---------------- host wrapper ---------------------------------------------------
def _batch_block(n):
    """v7x (2 TCs/chip): keep batch on a parallel grid. Single-TC chips: collapse."""
    try:
        kind = jax.devices()[0].device_kind.lower()
    except Exception:
        kind = ""
    return 1 if "v7" in kind else n


def transformer_encoder(x_lne, params):
    """x_lne: (L, N, E) float32 (PyTorch layout). Returns (N, 256, L)."""
    L, N, E = x_lne.shape
    x_nle = jnp.transpose(x_lne, (1, 0, 2))                              # (N, L, E)

    # one-time host transform: fold 1/sqrt(head_dim) into the q-projection
    scale = 1.0 / math.sqrt(HEAD_DIM)
    w_in = params["w_in"].at[:, :, :E].multiply(scale)
    b_in = params["b_in"].at[:, :, :E].multiply(scale)

    weight_args = [
        params["pos"],
        w_in, b_in, params["w_o"], params["b_o"],
        params["g1"], params["bt1"],
        params["w_f1"], params["b_f1"], params["w_f2"], params["b_f2"],
        params["g2"], params["bt2"],
        params["w_out"], params["b_out"],
    ]

    def full_spec(arr):
        nd = arr.ndim
        return pl.BlockSpec(arr.shape, lambda b, _nd=nd: (0,) * _nd)

    B = _batch_block(N)
    in_specs = [pl.BlockSpec((B, L, E), lambda b: (b, 0, 0))] + \
               [full_spec(a) for a in weight_args]

    out = pl.pallas_call(
        encoder_kernel,
        out_shape=jax.ShapeDtypeStruct((N, L, OUT_DIM), jnp.float32),
        grid=(N // B,),
        in_specs=in_specs,
        out_specs=pl.BlockSpec((B, L, OUT_DIM), lambda b: (b, 0, 0)),
        compiler_params=pltpu.CompilerParams(dimension_semantics=("parallel",)),
    )(x_nle, *weight_args)                                               # (N, L, 256)

    # keep the kernel output lane-dense (last dim 256); permute(1,2,0) on host
    return jnp.transpose(out, (0, 2, 1))                                 # (N, 256, L)


# ---------------- pure-JAX reference (same math, for a silent sanity check) ------
def reference(x_lne, params):
    E, D, H = EMBED_DIM, HEAD_DIM, NUM_HEADS
    scale = 1.0 / math.sqrt(D)
    x = jnp.transpose(x_lne, (1, 0, 2)) + params["pos"][None]            # (N, L, E)

    def one_batch(xb):                                                   # (L, E)
        y = xb
        for l in range(NUM_LAYERS):
            qkv = y @ params["w_in"][l] + params["b_in"][l]              # (L, 3E)
            q, k, v = qkv[:, :E], qkv[:, E:2 * E], qkv[:, 2 * E:]
            outs = []
            for h in range(H):
                sl = slice(h * D, (h + 1) * D)
                s = (q[:, sl] @ k[:, sl].T) * scale
                p = jax.nn.softmax(s, axis=-1)
                outs.append(p @ v[:, sl])
            attn = jnp.concatenate(outs, -1) @ params["w_o"][l] + params["b_o"][l]
            y = _layer_norm(y + attn, params["g1"][l], params["bt1"][l])
            hdn = jnp.maximum(y @ params["w_f1"][l] + params["b_f1"][l], 0.0)
            ff = hdn @ params["w_f2"][l] + params["b_f2"][l]
            y = _layer_norm(y + ff, params["g2"][l], params["bt2"][l])
        return y @ params["w_out"] + params["b_out"]

    out = jax.vmap(one_batch)(x)                                         # (N, L, 256)
    return jnp.transpose(out, (0, 2, 1))


# ---------------- deterministic parameter construction ---------------------------
def make_params(key):
    ks = jax.random.split(key, 8)
    E, F, Lr = EMBED_DIM, FF_DIM, NUM_LAYERS
    s = 0.02
    return {
        # pos_encoder is zeros in __init__; use small randoms so the add is exercised
        "pos":   jax.random.normal(ks[0], (NUM_PATCHES, E), jnp.float32) * s,
        # all weight matrices stored pre-transposed (in_features, out_features)
        "w_in":  jax.random.normal(ks[1], (Lr, E, 3 * E), jnp.float32) * s,
        "b_in":  jnp.zeros((Lr, 1, 3 * E), jnp.float32),
        "w_o":   jax.random.normal(ks[2], (Lr, E, E), jnp.float32) * s,
        "b_o":   jnp.zeros((Lr, 1, E), jnp.float32),
        "g1":    jnp.ones((Lr, 1, E), jnp.float32),
        "bt1":   jnp.zeros((Lr, 1, E), jnp.float32),
        "w_f1":  jax.random.normal(ks[3], (Lr, E, F), jnp.float32) * s,
        "b_f1":  jnp.zeros((Lr, 1, F), jnp.float32),
        "w_f2":  jax.random.normal(ks[4], (Lr, F, E), jnp.float32) * s,
        "b_f2":  jnp.zeros((Lr, 1, E), jnp.float32),
        "g2":    jnp.ones((Lr, 1, E), jnp.float32),
        "bt2":   jnp.zeros((Lr, 1, E), jnp.float32),
        "w_out": jax.random.normal(ks[5], (E, OUT_DIM), jnp.float32) * s,
        "b_out": jax.random.normal(ks[6], (1, OUT_DIM), jnp.float32) * s,
    }


if __name__ == "__main__":
    key = jax.random.PRNGKey(0)
    kx, kp = jax.random.split(key)
    # PyTorch layout: (num_patches, batch, embed_dim) == (L, N, E)
    x = jax.random.normal(kx, (NUM_PATCHES, BATCH, EMBED_DIM), jnp.float32)
    params = make_params(kp)

    out = jax.block_until_ready(transformer_encoder(x, params))
    assert out.shape == (BATCH, OUT_DIM, NUM_PATCHES), out.shape

    ref = jax.block_until_ready(reference(x, params))
    # tolerance relaxed slightly: in-kernel softmax uses pl.reciprocal(approx=True)
    assert np.allclose(np.asarray(out), np.asarray(ref), atol=1e-3, rtol=1e-3)

    print("KERNEL_OK")
</pallas_src>

<mosaic_0001>
module attributes {stable_mosaic.version = 11 : i64} {
  func.func @encoder_kernel(%arg0: i32, %arg1: memref<2x8x32xf32, #tpu.memory_space<vmem>>, %arg2: memref<8x32xf32, #tpu.memory_space<vmem>>, %arg3: memref<2x32x96xf32, #tpu.memory_space<vmem>>, %arg4: memref<2x1x96xf32, #tpu.memory_space<vmem>>, %arg5: memref<2x32x32xf32, #tpu.memory_space<vmem>>, %arg6: memref<2x1x32xf32, #tpu.memory_space<vmem>>, %arg7: memref<2x1x32xf32, #tpu.memory_space<vmem>>, %arg8: memref<2x1x32xf32, #tpu.memory_space<vmem>>, %arg9: memref<2x32x64xf32, #tpu.memory_space<vmem>>, %arg10: memref<2x1x64xf32, #tpu.memory_space<vmem>>, %arg11: memref<2x64x32xf32, #tpu.memory_space<vmem>>, %arg12: memref<2x1x32xf32, #tpu.memory_space<vmem>>, %arg13: memref<2x1x32xf32, #tpu.memory_space<vmem>>, %arg14: memref<2x1x32xf32, #tpu.memory_space<vmem>>, %arg15: memref<32x256xf32, #tpu.memory_space<vmem>>, %arg16: memref<1x256xf32, #tpu.memory_space<vmem>>, %arg17: memref<2x8x256xf32, #tpu.memory_space<vmem>>) attributes {dimension_semantics = [#tpu.dimension_semantics<parallel>], iteration_bounds = array<i64: 1>, scalar_prefetch = 0 : i64, scratch_operands = 0 : i64, tpu.core_type = #tpu.core_type<tc>, window_params = [{transform_indices = @transform_0, window_bounds = array<i64: 2, 8, 32>}, {pipeline_mode = #tpu.pipeline_mode<synchronous>, transform_indices = @transform_1, window_bounds = array<i64: 8, 32>}, {pipeline_mode = #tpu.pipeline_mode<synchronous>, transform_indices = @transform_2, window_bounds = array<i64: 2, 32, 96>}, {pipeline_mode = #tpu.pipeline_mode<synchronous>, transform_indices = @transform_3, window_bounds = array<i64: 2, 1, 96>}, {pipeline_mode = #tpu.pipeline_mode<synchronous>, transform_indices = @transform_4, window_bounds = array<i64: 2, 32, 32>}, {pipeline_mode = #tpu.pipeline_mode<synchronous>, transform_indices = @transform_5, window_bounds = array<i64: 2, 1, 32>}, {pipeline_mode = #tpu.pipeline_mode<synchronous>, transform_indices = @transform_6, window_bounds = array<i64: 2, 1, 32>}, {pipeline_mode = #tpu.pipeline_mode<synchronous>, transform_indices = @transform_7, window_bounds = array<i64: 2, 1, 32>}, {pipeline_mode = #tpu.pipeline_mode<synchronous>, transform_indices = @transform_8, window_bounds = array<i64: 2, 32, 64>}, {pipeline_mode = #tpu.pipeline_mode<synchronous>, transform_indices = @transform_9, window_bounds = array<i64: 2, 1, 64>}, {pipeline_mode = #tpu.pipeline_mode<synchronous>, transform_indices = @transform_10, window_bounds = array<i64: 2, 64, 32>}, {pipeline_mode = #tpu.pipeline_mode<synchronous>, transform_indices = @transform_11, window_bounds = array<i64: 2, 1, 32>}, {pipeline_mode = #tpu.pipeline_mode<synchronous>, transform_indices = @transform_12, window_bounds = array<i64: 2, 1, 32>}, {pipeline_mode = #tpu.pipeline_mode<synchronous>, transform_indices = @transform_13, window_bounds = array<i64: 2, 1, 32>}, {pipeline_mode = #tpu.pipeline_mode<synchronous>, transform_indices = @transform_14, window_bounds = array<i64: 32, 256>}, {pipeline_mode = #tpu.pipeline_mode<synchronous>, transform_indices = @transform_15, window_bounds = array<i64: 1, 256>}, {transform_indices = @transform_16, window_bounds = array<i64: 2, 8, 256>}]} {
    %c0 = arith.constant 0 : index
    %c0_0 = arith.constant 0 : index
    %c0_1 = arith.constant 0 : index
    %0 = vector.load %arg1[%c0, %c0_0, %c0_1] : memref<2x8x32xf32, #tpu.memory_space<vmem>>, vector<2x8x32xf32>
    %c0_2 = arith.constant 0 : index
    %c0_3 = arith.constant 0 : index
    %1 = vector.load %arg2[%c0_2, %c0_3] : memref<8x32xf32, #tpu.memory_space<vmem>>, vector<8x32xf32>
    %2 = vector.shape_cast %1 : vector<8x32xf32> to vector<1x8x32xf32>
    %3 = vector.broadcast %2 : vector<1x8x32xf32> to vector<2x8x32xf32>
    %4 = arith.addf %0, %3 : vector<2x8x32xf32>
    %5 = vector.shape_cast %4 : vector<2x8x32xf32> to vector<16x32xf32>
    %c0_4 = arith.constant 0 : index
    %c0_5 = arith.constant 0 : index
    %c0_6 = arith.constant 0 : index
    %6 = vector.load %arg3[%c0_4, %c0_5, %c0_6] : memref<2x32x96xf32, #tpu.memory_space<vmem>>, vector<1x32x96xf32>
    %7 = vector.shape_cast %6 : vector<1x32x96xf32> to vector<32x96xf32>
    %cst = arith.constant dense<0.000000e+00> : vector<16x96xf32>
    %8 = tpu.matmul %5, %7, %cst {dimension_numbers = #tpu.dot_dimension_numbers<[1], [0], [0], [1], [0, 0, 1, 1], [], []>} : vector<16x32xf32>, vector<32x96xf32>, vector<16x96xf32> -> vector<16x96xf32>
    %c0_7 = arith.constant 0 : index
    %c0_8 = arith.constant 0 : index
    %c0_9 = arith.constant 0 : index
    %9 = vector.load %arg4[%c0_7, %c0_8, %c0_9] : memref<2x1x96xf32, #tpu.memory_space<vmem>>, vector<1x1x96xf32>
    %10 = vector.shape_cast %9 : vector<1x1x96xf32> to vector<1x96xf32>
    %11 = vector.broadcast %10 : vector<1x96xf32> to vector<16x96xf32>
    %12 = arith.addf %8, %11 : vector<16x96xf32>
    %13 = vector.shape_cast %12 : vector<16x96xf32> to vector<2x8x96xf32>
    %14 = vector.extract_strided_slice %13 {offsets = [0, 0, 0], sizes = [2, 8, 8], strides = [1, 1, 1]} : vector<2x8x96xf32> to vector<2x8x8xf32>
    %15 = vector.extract_strided_slice %13 {offsets = [0, 0, 8], sizes = [2, 8, 8], strides = [1, 1, 1]} : vector<2x8x96xf32> to vector<2x8x8xf32>
    %16 = vector.extract_strided_slice %13 {offsets = [0, 0, 16], sizes = [2, 8, 8], strides = [1, 1, 1]} : vector<2x8x96xf32> to vector<2x8x8xf32>
    %17 = vector.extract_strided_slice %13 {offsets = [0, 0, 24], sizes = [2, 8, 8], strides = [1, 1, 1]} : vector<2x8x96xf32> to vector<2x8x8xf32>
    %18 = tpu.concatenate %14, %15, %16, %17 in 0 : vector<2x8x8xf32>, vector<2x8x8xf32>, vector<2x8x8xf32>, vector<2x8x8xf32> -> vector<8x8x8xf32>
    %19 = vector.extract_strided_slice %13 {offsets = [0, 0, 32], sizes = [2, 8, 8], strides = [1, 1, 1]} : vector<2x8x96xf32> to vector<2x8x8xf32>
    %20 = vector.extract_strided_slice %13 {offsets = [0, 0, 40], sizes = [2, 8, 8], strides = [1, 1, 1]} : vector<2x8x96xf32> to vector<2x8x8xf32>
    %21 = vector.extract_strided_slice %13 {offsets = [0, 0, 48], sizes = [2, 8, 8], strides = [1, 1, 1]} : vector<2x8x96xf32> to vector<2x8x8xf32>
    %22 = vector.extract_strided_slice %13 {offsets = [0, 0, 56], sizes = [2, 8, 8], strides = [1, 1, 1]} : vector<2x8x96xf32> to vector<2x8x8xf32>
    %23 = tpu.concatenate %19, %20, %21, %22 in 0 : vector<2x8x8xf32>, vector<2x8x8xf32>, vector<2x8x8xf32>, vector<2x8x8xf32> -> vector<8x8x8xf32>
    %24 = vector.extract_strided_slice %13 {offsets = [0, 0, 64], sizes = [2, 8, 8], strides = [1, 1, 1]} : vector<2x8x96xf32> to vector<2x8x8xf32>
    %25 = vector.extract_strided_slice %13 {offsets = [0, 0, 72], sizes = [2, 8, 8], strides = [1, 1, 1]} : vector<2x8x96xf32> to vector<2x8x8xf32>
    %26 = vector.extract_strided_slice %13 {offsets = [0, 0, 80], sizes = [2, 8, 8], strides = [1, 1, 1]} : vector<2x8x96xf32> to vector<2x8x8xf32>
    %27 = vector.extract_strided_slice %13 {offsets = [0, 0, 88], sizes = [2, 8, 8], strides = [1, 1, 1]} : vector<2x8x96xf32> to vector<2x8x8xf32>
    %28 = tpu.concatenate %24, %25, %26, %27 in 0 : vector<2x8x8xf32>, vector<2x8x8xf32>, vector<2x8x8xf32>, vector<2x8x8xf32> -> vector<8x8x8xf32>
    "tpu.trace_start"() <{level = 10 : i32, message = "bld,bmd->blm"}> : () -> ()
    %cst_10 = arith.constant dense<0.000000e+00> : vector<8x8x8xf32>
    %29 = tpu.matmul %18, %23, %cst_10 {dimension_numbers = #tpu.dot_dimension_numbers<[2], [2], [1], [1], [0, 0, 0, 1, 1, 1], [0], [0]>} : vector<8x8x8xf32>, vector<8x8x8xf32>, vector<8x8x8xf32> -> vector<8x8x8xf32>
    "tpu.trace_stop"() : () -> ()
    %cst_11 = arith.constant dense<0xFF800000> : vector<8x8xf32>
    %30 = vector.multi_reduction <maximumf>, %29, %cst_11 [2] : vector<8x8x8xf32> to vector<8x8xf32>
    %31 = vector.shape_cast %30 : vector<8x8xf32> to vector<8x8x1xf32>
    %32 = vector.broadcast %31 : vector<8x8x1xf32> to vector<8x8x8xf32>
    %33 = arith.subf %29, %32 : vector<8x8x8xf32>
    %34 = math.exp %33 : vector<8x8x8xf32>
    %cst_12 = arith.constant dense<0.000000e+00> : vector<8x8xf32>
    %35 = vector.multi_reduction <add>, %34, %cst_12 [2] : vector<8x8x8xf32> to vector<8x8xf32>
    %36 = vector.shape_cast %35 : vector<8x8xf32> to vector<8x8x1xf32>
    %37 = tpu.reciprocal %36 {approx = true} : vector<8x8x1xf32> -> vector<8x8x1xf32>
    %38 = vector.broadcast %37 : vector<8x8x1xf32> to vector<8x8x8xf32>
    %39 = arith.mulf %34, %38 : vector<8x8x8xf32>
    "tpu.trace_start"() <{level = 10 : i32, message = "blm,bmd->bld"}> : () -> ()
    %cst_13 = arith.constant dense<0.000000e+00> : vector<8x8x8xf32>
    %40 = tpu.matmul %39, %28, %cst_13 {dimension_numbers = #tpu.dot_dimension_numbers<[2], [1], [1], [2], [0, 0, 0, 1, 1, 2], [0], [0]>} : vector<8x8x8xf32>, vector<8x8x8xf32>, vector<8x8x8xf32> -> vector<8x8x8xf32>
    "tpu.trace_stop"() : () -> ()
    %41 = vector.extract_strided_slice %40 {offsets = [0, 0, 0], sizes = [2, 8, 8], strides = [1, 1, 1]} : vector<8x8x8xf32> to vector<2x8x8xf32>
    %42 = vector.extract_strided_slice %40 {offsets = [2, 0, 0], sizes = [2, 8, 8], strides = [1, 1, 1]} : vector<8x8x8xf32> to vector<2x8x8xf32>
    %43 = vector.extract_strided_slice %40 {offsets = [4, 0, 0], sizes = [2, 8, 8], strides = [1, 1, 1]} : vector<8x8x8xf32> to vector<2x8x8xf32>
    %44 = vector.extract_strided_slice %40 {offsets = [6, 0, 0], sizes = [2, 8, 8], strides = [1, 1, 1]} : vector<8x8x8xf32> to vector<2x8x8xf32>
    %45 = tpu.concatenate %41, %42, %43, %44 in 2 : vector<2x8x8xf32>, vector<2x8x8xf32>, vector<2x8x8xf32>, vector<2x8x8xf32> -> vector<2x8x32xf32>
    %46 = vector.shape_cast %45 : vector<2x8x32xf32> to vector<16x32xf32>
    %c0_14 = arith.constant 0 : index
    %c0_15 = arith.constant 0 : index
    %c0_16 = arith.constant 0 : index
    %47 = vector.load %arg5[%c0_14, %c0_15, %c0_16] : memref<2x32x32xf32, #tpu.memory_space<vmem>>, vector<1x32x32xf32>
    %48 = vector.shape_cast %47 : vector<1x32x32xf32> to vector<32x32xf32>
    %cst_17 = arith.constant dense<0.000000e+00> : vector<16x32xf32>
    %49 = tpu.matmul %46, %48, %cst_17 {dimension_numbers = #tpu.dot_dimension_numbers<[1], [0], [0], [1], [0, 0, 1, 1], [], []>} : vector<16x32xf32>, vector<32x32xf32>, vector<16x32xf32> -> vector<16x32xf32>
    %c0_18 = arith.constant 0 : index
    %c0_19 = arith.constant 0 : index
    %c0_20 = arith.constant 0 : index
    %50 = vector.load %arg6[%c0_18, %c0_19, %c0_20] : memref<2x1x32xf32, #tpu.memory_space<vmem>>, vector<1x1x32xf32>
    %51 = vector.shape_cast %50 : vector<1x1x32xf32> to vector<1x32xf32>
    %52 = vector.broadcast %51 : vector<1x32xf32> to vector<16x32xf32>
    %53 = arith.addf %49, %52 : vector<16x32xf32>
    %54 = arith.addf %5, %53 : vector<16x32xf32>
    %c0_21 = arith.constant 0 : index
    %c0_22 = arith.constant 0 : index
    %c0_23 = arith.constant 0 : index
    %55 = vector.load %arg7[%c0_21, %c0_22, %c0_23] : memref<2x1x32xf32, #tpu.memory_space<vmem>>, vector<1x1x32xf32>
    %56 = vector.shape_cast %55 : vector<1x1x32xf32> to vector<1x32xf32>
    %c0_24 = arith.constant 0 : index
    %c0_25 = arith.constant 0 : index
    %c0_26 = arith.constant 0 : index
    %57 = vector.load %arg8[%c0_24, %c0_25, %c0_26] : memref<2x1x32xf32, #tpu.memory_space<vmem>>, vector<1x1x32xf32>
    %58 = vector.shape_cast %57 : vector<1x1x32xf32> to vector<1x32xf32>
    %cst_27 = arith.constant dense<0.000000e+00> : vector<16xf32>
    %59 = vector.multi_reduction <add>, %54, %cst_27 [1] : vector<16x32xf32> to vector<16xf32>
    %60 = vector.shape_cast %59 : vector<16xf32> to vector<16x1xf32>
    %cst_28 = arith.constant 3.200000e+01 : f32
    %61 = vector.broadcast %cst_28 : f32 to vector<16x1xf32>
    %62 = arith.divf %60, %61 : vector<16x1xf32>
    %63 = vector.broadcast %62 : vector<16x1xf32> to vector<16x32xf32>
    %64 = arith.subf %54, %63 : vector<16x32xf32>
    %65 = arith.mulf %64, %64 : vector<16x32xf32>
    %cst_29 = arith.constant dense<0.000000e+00> : vector<16xf32>
    %66 = vector.multi_reduction <add>, %65, %cst_29 [1] : vector<16x32xf32> to vector<16xf32>
    %67 = vector.shape_cast %66 : vector<16xf32> to vector<16x1xf32>
    %cst_30 = arith.constant 3.200000e+01 : f32
    %68 = vector.broadcast %cst_30 : f32 to vector<16x1xf32>
    %69 = arith.divf %67, %68 : vector<16x1xf32>
    %70 = vector.broadcast %62 : vector<16x1xf32> to vector<16x32xf32>
    %71 = arith.subf %54, %70 : vector<16x32xf32>
    %cst_31 = arith.constant 9.99999974E-6 : f32
    %72 = vector.broadcast %cst_31 : f32 to vector<16x1xf32>
    %73 = arith.addf %69, %72 : vector<16x1xf32>
    %74 = math.rsqrt %73 : vector<16x1xf32>
    %75 = vector.broadcast %74 : vector<16x1xf32> to vector<16x32xf32>
    %76 = arith.mulf %71, %75 : vector<16x32xf32>
    %77 = vector.broadcast %56 : vector<1x32xf32> to vector<16x32xf32>
    %78 = arith.mulf %76, %77 : vector<16x32xf32>
    %79 = vector.broadcast %58 : vector<1x32xf32> to vector<16x32xf32>
    %80 = arith.addf %78, %79 : vector<16x32xf32>
    %c0_32 = arith.constant 0 : index
    %c0_33 = arith.constant 0 : index
    %c0_34 = arith.constant 0 : index
    %81 = vector.load %arg9[%c0_32, %c0_33, %c0_34] : memref<2x32x64xf32, #tpu.memory_space<vmem>>, vector<1x32x64xf32>
    %82 = vector.shape_cast %81 : vector<1x32x64xf32> to vector<32x64xf32>
    %cst_35 = arith.constant dense<0.000000e+00> : vector<16x64xf32>
    %83 = tpu.matmul %80, %82, %cst_35 {dimension_numbers = #tpu.dot_dimension_numbers<[1], [0], [0], [1], [0, 0, 1, 1], [], []>} : vector<16x32xf32>, vector<32x64xf32>, vector<16x64xf32> -> vector<16x64xf32>
    %c0_36 = arith.constant 0 : index
    %c0_37 = arith.constant 0 : index
    %c0_38 = arith.constant 0 : index
    %84 = vector.load %arg10[%c0_36, %c0_37, %c0_38] : memref<2x1x64xf32, #tpu.memory_space<vmem>>, vector<1x1x64xf32>
    %85 = vector.shape_cast %84 : vector<1x1x64xf32> to vector<1x64xf32>
    %86 = vector.broadcast %85 : vector<1x64xf32> to vector<16x64xf32>
    %87 = arith.addf %83, %86 : vector<16x64xf32>
    %cst_39 = arith.constant 0.000000e+00 : f32
    %88 = vector.broadcast %cst_39 : f32 to vector<16x64xf32>
    %89 = arith.maximumf %87, %88 : vector<16x64xf32>
    %c0_40 = arith.constant 0 : index
    %c0_41 = arith.constant 0 : index
    %c0_42 = arith.constant 0 : index
    %90 = vector.load %arg11[%c0_40, %c0_41, %c0_42] : memref<2x64x32xf32, #tpu.memory_space<vmem>>, vector<1x64x32xf32>
    %91 = vector.shape_cast %90 : vector<1x64x32xf32> to vector<64x32xf32>
    %cst_43 = arith.constant dense<0.000000e+00> : vector<16x32xf32>
    %92 = tpu.matmul %89, %91, %cst_43 {dimension_numbers = #tpu.dot_dimension_numbers<[1], [0], [0], [1], [0, 0, 1, 1], [], []>} : vector<16x64xf32>, vector<64x32xf32>, vector<16x32xf32> -> vector<16x32xf32>
    %c0_44 = arith.constant 0 : index
    %c0_45 = arith.constant 0 : index
    %c0_46 = arith.constant 0 : index
    %93 = vector.load %arg12[%c0_44, %c0_45, %c0_46] : memref<2x1x32xf32, #tpu.memory_space<vmem>>, vector<1x1x32xf32>
    %94 = vector.shape_cast %93 : vector<1x1x32xf32> to vector<1x32xf32>
    %95 = vector.broadcast %94 : vector<1x32xf32> to vector<16x32xf32>
    %96 = arith.addf %92, %95 : vector<16x32xf32>
    %97 = arith.addf %80, %96 : vector<16x32xf32>
    %c0_47 = arith.constant 0 : index
    %c0_48 = arith.constant 0 : index
    %c0_49 = arith.constant 0 : index
    %98 = vector.load %arg13[%c0_47, %c0_48, %c0_49] : memref<2x1x32xf32, #tpu.memory_space<vmem>>, vector<1x1x32xf32>
    %99 = vector.shape_cast %98 : vector<1x1x32xf32> to vector<1x32xf32>
    %c0_50 = arith.constant 0 : index
    %c0_51 = arith.constant 0 : index
    %c0_52 = arith.constant 0 : index
    %100 = vector.load %arg14[%c0_50, %c0_51, %c0_52] : memref<2x1x32xf32, #tpu.memory_space<vmem>>, vector<1x1x32xf32>
    %101 = vector.shape_cast %100 : vector<1x1x32xf32> to vector<1x32xf32>
    %cst_53 = arith.constant dense<0.000000e+00> : vector<16xf32>
    %102 = vector.multi_reduction <add>, %97, %cst_53 [1] : vector<16x32xf32> to vector<16xf32>
    %103 = vector.shape_cast %102 : vector<16xf32> to vector<16x1xf32>
    %cst_54 = arith.constant 3.200000e+01 : f32
    %104 = vector.broadcast %cst_54 : f32 to vector<16x1xf32>
    %105 = arith.divf %103, %104 : vector<16x1xf32>
    %106 = vector.broadcast %105 : vector<16x1xf32> to vector<16x32xf32>
    %107 = arith.subf %97, %106 : vector<16x32xf32>
    %108 = arith.mulf %107, %107 : vector<16x32xf32>
    %cst_55 = arith.constant dense<0.000000e+00> : vector<16xf32>
    %109 = vector.multi_reduction <add>, %108, %cst_55 [1] : vector<16x32xf32> to vector<16xf32>
    %110 = vector.shape_cast %109 : vector<16xf32> to vector<16x1xf32>
    %cst_56 = arith.constant 3.200000e+01 : f32
    %111 = vector.broadcast %cst_56 : f32 to vector<16x1xf32>
    %112 = arith.divf %110, %111 : vector<16x1xf32>
    %113 = vector.broadcast %105 : vector<16x1xf32> to vector<16x32xf32>
    %114 = arith.subf %97, %113 : vector<16x32xf32>
    %cst_57 = arith.constant 9.99999974E-6 : f32
    %115 = vector.broadcast %cst_57 : f32 to vector<16x1xf32>
    %116 = arith.addf %112, %115 : vector<16x1xf32>
    %117 = math.rsqrt %116 : vector<16x1xf32>
    %118 = vector.broadcast %117 : vector<16x1xf32> to vector<16x32xf32>
    %119 = arith.mulf %114, %118 : vector<16x32xf32>
    %120 = vector.broadcast %99 : vector<1x32xf32> to vector<16x32xf32>
    %121 = arith.mulf %119, %120 : vector<16x32xf32>
    %122 = vector.broadcast %101 : vector<1x32xf32> to vector<16x32xf32>
    %123 = arith.addf %121, %122 : vector<16x32xf32>
    %c1 = arith.constant 1 : index
    %c0_58 = arith.constant 0 : index
    %c0_59 = arith.constant 0 : index
    %124 = vector.load %arg3[%c1, %c0_58, %c0_59] : memref<2x32x96xf32, #tpu.memory_space<vmem>>, vector<1x32x96xf32>
    %125 = vector.shape_cast %124 : vector<1x32x96xf32> to vector<32x96xf32>
    %cst_60 = arith.constant dense<0.000000e+00> : vector<16x96xf32>
    %126 = tpu.matmul %123, %125, %cst_60 {dimension_numbers = #tpu.dot_dimension_numbers<[1], [0], [0], [1], [0, 0, 1, 1], [], []>} : vector<16x32xf32>, vector<32x96xf32>, vector<16x96xf32> -> vector<16x96xf32>
    %c1_61 = arith.constant 1 : index
    %c0_62 = arith.constant 0 : index
    %c0_63 = arith.constant 0 : index
    %127 = vector.load %arg4[%c1_61, %c0_62, %c0_63] : memref<2x1x96xf32, #tpu.memory_space<vmem>>, vector<1x1x96xf32>
    %128 = vector.shape_cast %127 : vector<1x1x96xf32> to vector<1x96xf32>
    %129 = vector.broadcast %128 : vector<1x96xf32> to vector<16x96xf32>
    %130 = arith.addf %126, %129 : vector<16x96xf32>
    %131 = vector.shape_cast %130 : vector<16x96xf32> to vector<2x8x96xf32>
    %132 = vector.extract_strided_slice %131 {offsets = [0, 0, 0], sizes = [2, 8, 8], strides = [1, 1, 1]} : vector<2x8x96xf32> to vector<2x8x8xf32>
    %133 = vector.extract_strided_slice %131 {offsets = [0, 0, 8], sizes = [2, 8, 8], strides = [1, 1, 1]} : vector<2x8x96xf32> to vector<2x8x8xf32>
    %134 = vector.extract_strided_slice %131 {offsets = [0, 0, 16], sizes = [2, 8, 8], strides = [1, 1, 1]} : vector<2x8x96xf32> to vector<2x8x8xf32>
    %135 = vector.extract_strided_slice %131 {offsets = [0, 0, 24], sizes = [2, 8, 8], strides = [1, 1, 1]} : vector<2x8x96xf32> to vector<2x8x8xf32>
    %136 = tpu.concatenate %132, %133, %134, %135 in 0 : vector<2x8x8xf32>, vector<2x8x8xf32>, vector<2x8x8xf32>, vector<2x8x8xf32> -> vector<8x8x8xf32>
    %137 = vector.extract_strided_slice %131 {offsets = [0, 0, 32], sizes = [2, 8, 8], strides = [1, 1, 1]} : vector<2x8x96xf32> to vector<2x8x8xf32>
    %138 = vector.extract_strided_slice %131 {offsets = [0, 0, 40], sizes = [2, 8, 8], strides = [1, 1, 1]} : vector<2x8x96xf32> to vector<2x8x8xf32>
    %139 = vector.extract_strided_slice %131 {offsets = [0, 0, 48], sizes = [2, 8, 8], strides = [1, 1, 1]} : vector<2x8x96xf32> to vector<2x8x8xf32>
    %140 = vector.extract_strided_slice %131 {offsets = [0, 0, 56], sizes = [2, 8, 8], strides = [1, 1, 1]} : vector<2x8x96xf32> to vector<2x8x8xf32>
    %141 = tpu.concatenate %137, %138, %139, %140 in 0 : vector<2x8x8xf32>, vector<2x8x8xf32>, vector<2x8x8xf32>, vector<2x8x8xf32> -> vector<8x8x8xf32>
    %142 = vector.extract_strided_slice %131 {offsets = [0, 0, 64], sizes = [2, 8, 8], strides = [1, 1, 1]} : vector<2x8x96xf32> to vector<2x8x8xf32>
    %143 = vector.extract_strided_slice %131 {offsets = [0, 0, 72], sizes = [2, 8, 8], strides = [1, 1, 1]} : vector<2x8x96xf32> to vector<2x8x8xf32>
    %144 = vector.extract_strided_slice %131 {offsets = [0, 0, 80], sizes = [2, 8, 8], strides = [1, 1, 1]} : vector<2x8x96xf32> to vector<2x8x8xf32>
    %145 = vector.extract_strided_slice %131 {offsets = [0, 0, 88], sizes = [2, 8, 8], strides = [1, 1, 1]} : vector<2x8x96xf32> to vector<2x8x8xf32>
    %146 = tpu.concatenate %142, %143, %144, %145 in 0 : vector<2x8x8xf32>, vector<2x8x8xf32>, vector<2x8x8xf32>, vector<2x8x8xf32> -> vector<8x8x8xf32>
    "tpu.trace_start"() <{level = 10 : i32, message = "bld,bmd->blm"}> : () -> ()
    %cst_64 = arith.constant dense<0.000000e+00> : vector<8x8x8xf32>
    %147 = tpu.matmul %136, %141, %cst_64 {dimension_numbers = #tpu.dot_dimension_numbers<[2], [2], [1], [1], [0, 0, 0, 1, 1, 1], [0], [0]>} : vector<8x8x8xf32>, vector<8x8x8xf32>, vector<8x8x8xf32> -> vector<8x8x8xf32>
    "tpu.trace_stop"() : () -> ()
    %cst_65 = arith.constant dense<0xFF800000> : vector<8x8xf32>
    %148 = vector.multi_reduction <maximumf>, %147, %cst_65 [2] : vector<8x8x8xf32> to vector<8x8xf32>
    %149 = vector.shape_cast %148 : vector<8x8xf32> to vector<8x8x1xf32>
    %150 = vector.broadcast %149 : vector<8x8x1xf32> to vector<8x8x8xf32>
    %151 = arith.subf %147, %150 : vector<8x8x8xf32>
    %152 = math.exp %151 : vector<8x8x8xf32>
    %cst_66 = arith.constant dense<0.000000e+00> : vector<8x8xf32>
    %153 = vector.multi_reduction <add>, %152, %cst_66 [2] : vector<8x8x8xf32> to vector<8x8xf32>
    %154 = vector.shape_cast %153 : vector<8x8xf32> to vector<8x8x1xf32>
    %155 = tpu.reciprocal %154 {approx = true} : vector<8x8x1xf32> -> vector<8x8x1xf32>
    %156 = vector.broadcast %155 : vector<8x8x1xf32> to vector<8x8x8xf32>
    %157 = arith.mulf %152, %156 : vector<8x8x8xf32>
    "tpu.trace_start"() <{level = 10 : i32, message = "blm,bmd->bld"}> : () -> ()
    %cst_67 = arith.constant dense<0.000000e+00> : vector<8x8x8xf32>
    %158 = tpu.matmul %157, %146, %cst_67 {dimension_numbers = #tpu.dot_dimension_numbers<[2], [1], [1], [2], [0, 0, 0, 1, 1, 2], [0], [0]>} : vector<8x8x8xf32>, vector<8x8x8xf32>, vector<8x8x8xf32> -> vector<8x8x8xf32>
    "tpu.trace_stop"() : () -> ()
    %159 = vector.extract_strided_slice %158 {offsets = [0, 0, 0], sizes = [2, 8, 8], strides = [1, 1, 1]} : vector<8x8x8xf32> to vector<2x8x8xf32>
    %160 = vector.extract_strided_slice %158 {offsets = [2, 0, 0], sizes = [2, 8, 8], strides = [1, 1, 1]} : vector<8x8x8xf32> to vector<2x8x8xf32>
    %161 = vector.extract_strided_slice %158 {offsets = [4, 0, 0], sizes = [2, 8, 8], strides = [1, 1, 1]} : vector<8x8x8xf32> to vector<2x8x8xf32>
    %162 = vector.extract_strided_slice %158 {offsets = [6, 0, 0], sizes = [2, 8, 8], strides = [1, 1, 1]} : vector<8x8x8xf32> to vector<2x8x8xf32>
    %163 = tpu.concatenate %159, %160, %161, %162 in 2 : vector<2x8x8xf32>, vector<2x8x8xf32>, vector<2x8x8xf32>, vector<2x8x8xf32> -> vector<2x8x32xf32>
    %164 = vector.shape_cast %163 : vector<2x8x32xf32> to vector<16x32xf32>
    %c1_68 = arith.constant 1 : index
    %c0_69 = arith.constant 0 : index
    %c0_70 = arith.constant 0 : index
    %165 = vector.load %arg5[%c1_68, %c0_69, %c0_70] : memref<2x32x32xf32, #tpu.memory_space<vmem>>, vector<1x32x32xf32>
    %166 = vector.shape_cast %165 : vector<1x32x32xf32> to vector<32x32xf32>
    %cst_71 = arith.constant dense<0.000000e+00> : vector<16x32xf32>
    %167 = tpu.matmul %164, %166, %cst_71 {dimension_numbers = #tpu.dot_dimension_numbers<[1], [0], [0], [1], [0, 0, 1, 1], [], []>} : vector<16x32xf32>, vector<32x32xf32>, vector<16x32xf32> -> vector<16x32xf32>
    %c1_72 = arith.constant 1 : index
    %c0_73 = arith.constant 0 : index
    %c0_74 = arith.constant 0 : index
    %168 = vector.load %arg6[%c1_72, %c0_73, %c0_74] : memref<2x1x32xf32, #tpu.memory_space<vmem>>, vector<1x1x32xf32>
    %169 = vector.shape_cast %168 : vector<1x1x32xf32> to vector<1x32xf32>
    %170 = vector.broadcast %169 : vector<1x32xf32> to vector<16x32xf32>
    %171 = arith.addf %167, %170 : vector<16x32xf32>
    %172 = arith.addf %123, %171 : vector<16x32xf32>
    %c1_75 = arith.constant 1 : index
    %c0_76 = arith.constant 0 : index
    %c0_77 = arith.constant 0 : index
    %173 = vector.load %arg7[%c1_75, %c0_76, %c0_77] : memref<2x1x32xf32, #tpu.memory_space<vmem>>, vector<1x1x32xf32>
    %174 = vector.shape_cast %173 : vector<1x1x32xf32> to vector<1x32xf32>
    %c1_78 = arith.constant 1 : index
    %c0_79 = arith.constant 0 : index
    %c0_80 = arith.constant 0 : index
    %175 = vector.load %arg8[%c1_78, %c0_79, %c0_80] : memref<2x1x32xf32, #tpu.memory_space<vmem>>, vector<1x1x32xf32>
    %176 = vector.shape_cast %175 : vector<1x1x32xf32> to vector<1x32xf32>
    %cst_81 = arith.constant dense<0.000000e+00> : vector<16xf32>
    %177 = vector.multi_reduction <add>, %172, %cst_81 [1] : vector<16x32xf32> to vector<16xf32>
    %178 = vector.shape_cast %177 : vector<16xf32> to vector<16x1xf32>
    %cst_82 = arith.constant 3.200000e+01 : f32
    %179 = vector.broadcast %cst_82 : f32 to vector<16x1xf32>
    %180 = arith.divf %178, %179 : vector<16x1xf32>
    %181 = vector.broadcast %180 : vector<16x1xf32> to vector<16x32xf32>
    %182 = arith.subf %172, %181 : vector<16x32xf32>
    %183 = arith.mulf %182, %182 : vector<16x32xf32>
    %cst_83 = arith.constant dense<0.000000e+00> : vector<16xf32>
    %184 = vector.multi_reduction <add>, %183, %cst_83 [1] : vector<16x32xf32> to vector<16xf32>
    %185 = vector.shape_cast %184 : vector<16xf32> to vector<16x1xf32>
    %cst_84 = arith.constant 3.200000e+01 : f32
    %186 = vector.broadcast %cst_84 : f32 to vector<16x1xf32>
    %187 = arith.divf %185, %186 : vector<16x1xf32>
    %188 = vector.broadcast %180 : vector<16x1xf32> to vector<16x32xf32>
    %189 = arith.subf %172, %188 : vector<16x32xf32>
    %cst_85 = arith.constant 9.99999974E-6 : f32
    %190 = vector.broadcast %cst_85 : f32 to vector<16x1xf32>
    %191 = arith.addf %187, %190 : vector<16x1xf32>
    %192 = math.rsqrt %191 : vector<16x1xf32>
    %193 = vector.broadcast %192 : vector<16x1xf32> to vector<16x32xf32>
    %194 = arith.mulf %189, %193 : vector<16x32xf32>
    %195 = vector.broadcast %174 : vector<1x32xf32> to vector<16x32xf32>
    %196 = arith.mulf %194, %195 : vector<16x32xf32>
    %197 = vector.broadcast %176 : vector<1x32xf32> to vector<16x32xf32>
    %198 = arith.addf %196, %197 : vector<16x32xf32>
    %c1_86 = arith.constant 1 : index
    %c0_87 = arith.constant 0 : index
    %c0_88 = arith.constant 0 : index
    %199 = vector.load %arg9[%c1_86, %c0_87, %c0_88] : memref<2x32x64xf32, #tpu.memory_space<vmem>>, vector<1x32x64xf32>
    %200 = vector.shape_cast %199 : vector<1x32x64xf32> to vector<32x64xf32>
    %cst_89 = arith.constant dense<0.000000e+00> : vector<16x64xf32>
    %201 = tpu.matmul %198, %200, %cst_89 {dimension_numbers = #tpu.dot_dimension_numbers<[1], [0], [0], [1], [0, 0, 1, 1], [], []>} : vector<16x32xf32>, vector<32x64xf32>, vector<16x64xf32> -> vector<16x64xf32>
    %c1_90 = arith.constant 1 : index
    %c0_91 = arith.constant 0 : index
    %c0_92 = arith.constant 0 : index
    %202 = vector.load %arg10[%c1_90, %c0_91, %c0_92] : memref<2x1x64xf32, #tpu.memory_space<vmem>>, vector<1x1x64xf32>
    %203 = vector.shape_cast %202 : vector<1x1x64xf32> to vector<1x64xf32>
    %204 = vector.broadcast %203 : vector<1x64xf32> to vector<16x64xf32>
    %205 = arith.addf %201, %204 : vector<16x64xf32>
    %cst_93 = arith.constant 0.000000e+00 : f32
    %206 = vector.broadcast %cst_93 : f32 to vector<16x64xf32>
    %207 = arith.maximumf %205, %206 : vector<16x64xf32>
    %c1_94 = arith.constant 1 : index
    %c0_95 = arith.constant 0 : index
    %c0_96 = arith.constant 0 : index
    %208 = vector.load %arg11[%c1_94, %c0_95, %c0_96] : memref<2x64x32xf32, #tpu.memory_space<vmem>>, vector<1x64x32xf32>
    %209 = vector.shape_cast %208 : vector<1x64x32xf32> to vector<64x32xf32>
    %cst_97 = arith.constant dense<0.000000e+00> : vector<16x32xf32>
    %210 = tpu.matmul %207, %209, %cst_97 {dimension_numbers = #tpu.dot_dimension_numbers<[1], [0], [0], [1], [0, 0, 1, 1], [], []>} : vector<16x64xf32>, vector<64x32xf32>, vector<16x32xf32> -> vector<16x32xf32>
    %c1_98 = arith.constant 1 : index
    %c0_99 = arith.constant 0 : index
    %c0_100 = arith.constant 0 : index
    %211 = vector.load %arg12[%c1_98, %c0_99, %c0_100] : memref<2x1x32xf32, #tpu.memory_space<vmem>>, vector<1x1x32xf32>
    %212 = vector.shape_cast %211 : vector<1x1x32xf32> to vector<1x32xf32>
    %213 = vector.broadcast %212 : vector<1x32xf32> to vector<16x32xf32>
    %214 = arith.addf %210, %213 : vector<16x32xf32>
    %215 = arith.addf %198, %214 : vector<16x32xf32>
    %c1_101 = arith.constant 1 : index
    %c0_102 = arith.constant 0 : index
    %c0_103 = arith.constant 0 : index
    %216 = vector.load %arg13[%c1_101, %c0_102, %c0_103] : memref<2x1x32xf32, #tpu.memory_space<vmem>>, vector<1x1x32xf32>
    %217 = vector.shape_cast %216 : vector<1x1x32xf32> to vector<1x32xf32>
    %c1_104 = arith.constant 1 : index
    %c0_105 = arith.constant 0 : index
    %c0_106 = arith.constant 0 : index
    %218 = vector.load %arg14[%c1_104, %c0_105, %c0_106] : memref<2x1x32xf32, #tpu.memory_space<vmem>>, vector<1x1x32xf32>
    %219 = vector.shape_cast %218 : vector<1x1x32xf32> to vector<1x32xf32>
    %cst_107 = arith.constant dense<0.000000e+00> : vector<16xf32>
    %220 = vector.multi_reduction <add>, %215, %cst_107 [1] : vector<16x32xf32> to vector<16xf32>
    %221 = vector.shape_cast %220 : vector<16xf32> to vector<16x1xf32>
    %cst_108 = arith.constant 3.200000e+01 : f32
    %222 = vector.broadcast %cst_108 : f32 to vector<16x1xf32>
    %223 = arith.divf %221, %222 : vector<16x1xf32>
    %224 = vector.broadcast %223 : vector<16x1xf32> to vector<16x32xf32>
    %225 = arith.subf %215, %224 : vector<16x32xf32>
    %226 = arith.mulf %225, %225 : vector<16x32xf32>
    %cst_109 = arith.constant dense<0.000000e+00> : vector<16xf32>
    %227 = vector.multi_reduction <add>, %226, %cst_109 [1] : vector<16x32xf32> to vector<16xf32>
    %228 = vector.shape_cast %227 : vector<16xf32> to vector<16x1xf32>
    %cst_110 = arith.constant 3.200000e+01 : f32
    %229 = vector.broadcast %cst_110 : f32 to vector<16x1xf32>
    %230 = arith.divf %228, %229 : vector<16x1xf32>
    %231 = vector.broadcast %223 : vector<16x1xf32> to vector<16x32xf32>
    %232 = arith.subf %215, %231 : vector<16x32xf32>
    %cst_111 = arith.constant 9.99999974E-6 : f32
    %233 = vector.broadcast %cst_111 : f32 to vector<16x1xf32>
    %234 = arith.addf %230, %233 : vector<16x1xf32>
    %235 = math.rsqrt %234 : vector<16x1xf32>
    %236 = vector.broadcast %235 : vector<16x1xf32> to vector<16x32xf32>
    %237 = arith.mulf %232, %236 : vector<16x32xf32>
    %238 = vector.broadcast %217 : vector<1x32xf32> to vector<16x32xf32>
    %239 = arith.mulf %237, %238 : vector<16x32xf32>
    %240 = vector.broadcast %219 : vector<1x32xf32> to vector<16x32xf32>
    %241 = arith.addf %239, %240 : vector<16x32xf32>
    %c0_112 = arith.constant 0 : index
    %c0_113 = arith.constant 0 : index
    %242 = vector.load %arg15[%c0_112, %c0_113] : memref<32x256xf32, #tpu.memory_space<vmem>>, vector<32x256xf32>
    %cst_114 = arith.constant dense<0.000000e+00> : vector<16x256xf32>
    %243 = tpu.matmul %241, %242, %cst_114 {dimension_numbers = #tpu.dot_dimension_numbers<[1], [0], [0], [1], [0, 0, 1, 1], [], []>} : vector<16x32xf32>, vector<32x256xf32>, vector<16x256xf32> -> vector<16x256xf32>
    %c0_115 = arith.constant 0 : index
    %c0_116 = arith.constant 0 : index
    %244 = vector.load %arg16[%c0_115, %c0_116] : memref<1x256xf32, #tpu.memory_space<vmem>>, vector<1x256xf32>
    %245 = vector.broadcast %244 : vector<1x256xf32> to vector<16x256xf32>
    %246 = arith.addf %243, %245 : vector<16x256xf32>
    %247 = vector.shape_cast %246 : vector<16x256xf32> to vector<2x8x256xf32>
    %c0_117 = arith.constant 0 : index
    %c0_118 = arith.constant 0 : index
    %c0_119 = arith.constant 0 : index
    %248 = vector.load %arg17[%c0_117, %c0_118, %c0_119] : memref<2x8x256xf32, #tpu.memory_space<vmem>>, vector<2x8x256xf32>
    tpu.vector_store %arg17[%c0_117, %c0_118, %c0_119], %247 {strides = array<i32>} : memref<2x8x256xf32, #tpu.memory_space<vmem>>, vector<2x8x256xf32>,
    return
  }
  func.func @transform_0(%arg0: i32) -> (i32, i32, i32) {
    %c0_i32 = arith.constant 0 : i32
    %c0_i32_0 = arith.constant 0 : i32
    %c0_i32_1 = arith.constant 0 : i32
    return %arg0, %c0_i32, %c0_i32_0 : i32, i32, i32
  }
  func.func @transform_1(%arg0: i32) -> (i32, i32) {
    %c0_i32 = arith.constant 0 : i32
    %c0_i32_0 = arith.constant 0 : i32
    %c0_i32_1 = arith.constant 0 : i32
    return %c0_i32, %c0_i32_0 : i32, i32
  }
  func.func @transform_2(%arg0: i32) -> (i32, i32, i32) {
    %c0_i32 = arith.constant 0 : i32
    %c0_i32_0 = arith.constant 0 : i32
    %c0_i32_1 = arith.constant 0 : i32
    %c0_i32_2 = arith.constant 0 : i32
    return %c0_i32, %c0_i32_0, %c0_i32_1 : i32, i32, i32
  }
  func.func @transform_3(%arg0: i32) -> (i32, i32, i32) {
    %c0_i32 = arith.constant 0 : i32
    %c0_i32_0 = arith.constant 0 : i32
    %c0_i32_1 = arith.constant 0 : i32
    %c0_i32_2 = arith.constant 0 : i32
    return %c0_i32, %c0_i32_0, %c0_i32_1 : i32, i32, i32
  }
  func.func @transform_4(%arg0: i32) -> (i32, i32, i32) {
    %c0_i32 = arith.constant 0 : i32
    %c0_i32_0 = arith.constant 0 : i32
    %c0_i32_1 = arith.constant 0 : i32
    %c0_i32_2 = arith.constant 0 : i32
    return %c0_i32, %c0_i32_0, %c0_i32_1 : i32, i32, i32
  }
  func.func @transform_5(%arg0: i32) -> (i32, i32, i32) {
    %c0_i32 = arith.constant 0 : i32
    %c0_i32_0 = arith.constant 0 : i32
    %c0_i32_1 = arith.constant 0 : i32
    %c0_i32_2 = arith.constant 0 : i32
    return %c0_i32, %c0_i32_0, %c0_i32_1 : i32, i32, i32
  }
  func.func @transform_6(%arg0: i32) -> (i32, i32, i32) {
    %c0_i32 = arith.constant 0 : i32
    %c0_i32_0 = arith.constant 0 : i32
    %c0_i32_1 = arith.constant 0 : i32
    %c0_i32_2 = arith.constant 0 : i32
    return %c0_i32, %c0_i32_0, %c0_i32_1 : i32, i32, i32
  }
  func.func @transform_7(%arg0: i32) -> (i32, i32, i32) {
    %c0_i32 = arith.constant 0 : i32
    %c0_i32_0 = arith.constant 0 : i32
    %c0_i32_1 = arith.constant 0 : i32
    %c0_i32_2 = arith.constant 0 : i32
    return %c0_i32, %c0_i32_0, %c0_i32_1 : i32, i32, i32
  }
  func.func @transform_8(%arg0: i32) -> (i32, i32, i32) {
    %c0_i32 = arith.constant 0 : i32
    %c0_i32_0 = arith.constant 0 : i32
    %c0_i32_1 = arith.constant 0 : i32
    %c0_i32_2 = arith.constant 0 : i32
    return %c0_i32, %c0_i32_0, %c0_i32_1 : i32, i32, i32
  }
  func.func @transform_9(%arg0: i32) -> (i32, i32, i32) {
    %c0_i32 = arith.constant 0 : i32
    %c0_i32_0 = arith.constant 0 : i32
    %c0_i32_1 = arith.constant 0 : i32
    %c0_i32_2 = arith.constant 0 : i32
    return %c0_i32, %c0_i32_0, %c0_i32_1 : i32, i32, i32
  }
  func.func @transform_10(%arg0: i32) -> (i32, i32, i32) {
    %c0_i32 = arith.constant 0 : i32
    %c0_i32_0 = arith.constant 0 : i32
    %c0_i32_1 = arith.constant 0 : i32
    %c0_i32_2 = arith.constant 0 : i32
    return %c0_i32, %c0_i32_0, %c0_i32_1 : i32, i32, i32
  }
  func.func @transform_11(%arg0: i32) -> (i32, i32, i32) {
    %c0_i32 = arith.constant 0 : i32
    %c0_i32_0 = arith.constant 0 : i32
    %c0_i32_1 = arith.constant 0 : i32
    %c0_i32_2 = arith.constant 0 : i32
    return %c0_i32, %c0_i32_0, %c0_i32_1 : i32, i32, i32
  }
  func.func @transform_12(%arg0: i32) -> (i32, i32, i32) {
    %c0_i32 = arith.constant 0 : i32
    %c0_i32_0 = arith.constant 0 : i32
    %c0_i32_1 = arith.constant 0 : i32
    %c0_i32_2 = arith.constant 0 : i32
    return %c0_i32, %c0_i32_0, %c0_i32_1 : i32, i32, i32
  }
  func.func @transform_13(%arg0: i32) -> (i32, i32, i32) {
    %c0_i32 = arith.constant 0 : i32
    %c0_i32_0 = arith.constant 0 : i32
    %c0_i32_1 = arith.constant 0 : i32
    %c0_i32_2 = arith.constant 0 : i32
    return %c0_i32, %c0_i32_0, %c0_i32_1 : i32, i32, i32
  }
  func.func @transform_14(%arg0: i32) -> (i32, i32) {
    %c0_i32 = arith.constant 0 : i32
    %c0_i32_0 = arith.constant 0 : i32
    %c0_i32_1 = arith.constant 0 : i32
    return %c0_i32, %c0_i32_0 : i32, i32
  }
  func.func @transform_15(%arg0: i32) -> (i32, i32) {
    %c0_i32 = arith.constant 0 : i32
    %c0_i32_0 = arith.constant 0 : i32
    %c0_i32_1 = arith.constant 0 : i32
    return %c0_i32, %c0_i32_0 : i32, i32
  }
  func.func @transform_16(%arg0: i32) -> (i32, i32, i32) {
    %c0_i32 = arith.constant 0 : i32
    %c0_i32_0 = arith.constant 0 : i32
    %c0_i32_1 = arith.constant 0 : i32
    return %arg0, %c0_i32, %c0_i32_0 : i32, i32, i32
  }
}

</mosaic_0001>

<bundles_post_ra>
// kernel: tpu_custom_call.1
= control target key start
LH: loop header
LB: loop body
LE: loop exit
PB: predicated region body
PF: predicated region fallthrough
CT: control target
= control target key end

     0   :  { %s5387_s0 = inlined_call_operand.hbm [shape: f32[2,8,32], index: 0, kind: input, shape index: {}]   ;;  %s5388_s1 = inlined_call_operand.hbm [shape: f32[8,32], index: 1, kind: input, shape index: {}]   ;;  %s5389_s2 = inlined_call_operand.vmem [shape: f32[2,32,96], index: 2, kind: input, shape index: {}]   ;;  %s5390_s3 = inlined_call_operand.vmem [shape: f32[2,1,96], index: 3, kind: input, shape index: {}]   ;;  %s5391_s4 = inlined_call_operand.vmem [shape: f32[2,32,32], index: 4, kind: input, shape index: {}]   ;;  %s5392_s5 = inlined_call_operand.vmem [shape: f32[2,1,32], index: 5, kind: input, shape index: {}]   ;;  %s5393_s6 = inlined_call_operand.vmem [shape: f32[2,1,32], index: 6, kind: input, shape index: {}]   ;;  %s5394_s7 = inlined_call_operand.vmem [shape: f32[2,1,32], index: 7, kind: input, shape index: {}]   ;;  %s5395_s8 = inlined_call_operand.vmem [shape: f32[2,32,64], index: 8, kind: input, shape index: {}]   ;;  %s5396_s9 = inlined_call_operand.vmem [shape: f32[2,1,64], index: 9, kind: input, shape index: {}]   ;;  %s5397_s10 = inlined_call_operand.vmem [shape: f32[2,64,32], index: 10, kind: input, shape index: {}]   ;;  %s5398_s11 = inlined_call_operand.vmem [shape: f32[2,1,32], index: 11, kind: input, shape index: {}]   ;;  %s5399_s12 = inlined_call_operand.vmem [shape: f32[2,1,32], index: 12, kind: input, shape index: {}]   ;;  %s5400_s13 = inlined_call_operand.vmem [shape: f32[2,1,32], index: 13, kind: input, shape index: {}]   ;;  %s5401_s14 = inlined_call_operand.hbm [shape: f32[32,256], index: 14, kind: input, shape index: {}]   ;;  %s5402_s15 = inlined_call_operand.vmem [shape: f32[1,256], index: 15, kind: input, shape index: {}]   ;;  %s5403_s16 = inlined_call_operand.hbm [shape: f32[2,8,256], index: 16, kind: output, shape index: {}]  }
   0x1   :  { %5408 = sst [smem:[#allocation12_spill]] %s5387_s0 }
   0x2   :  { %21 = vsyncpa [#allocation3], 0 }
   0x3   :  { %22 = vsyncpa [#allocation6], 0 }
   0x4   :  { %23 = vsyncpa [#allocation4], 0  ;;  %s4641_s21 = smov [#allocation5]   ;;  %s4642_s23 = smov [#allocation2]  }
   0x5   :  { %s42_s22 = sshll.u32 %s4641_s21, 4  ;;  %s29_s24 = sshll.u32 %s4642_s23, 4  ;;  %s43_s22 = int_to_ptr.vmem [resolvable:$true] %s42_s22  ;;  %s4742_s24 = int_to_ptr.vmem [resolvable:$true] %s29_s24 }
   0x6   :  { %s4547_s27 = scalar_lea.hbm %s5388_s1, 128 }
   0x7   :  { %p4548_p0 = scmp.ne.s32.totalorder %s5388_s1, %s4547_s27  ;;  %p4551_p1 = scmp.lt.u32.totalorder %s4547_s27, %s5388_s1 }
   0x9   :  { %p4553_p2 = pnand %p4551_p1, %p4548_p0 }
   0xb   :  { %4556 = shalt.err (!%p4553_p2)
}
   0xc   :  { %s4557_s17 = scalar_lea.vmem %s43_s22, 128  ;;  %p4562_p4 = scmp.lt.s32.totalorder %s43_s22, %s43_s22 }
   0xd   :  { %p4558_p3 = scmp.ne.s32.totalorder %s43_s22, %s4557_s17  ;;  %p4563_p5 = scmp.lt.s32.totalorder %s4557_s17, %s4557_s17 }
   0xf   :  { %p4564_p6 = por %p4563_p5, %p4562_p4 }
  0x11   :  { %p4565_p7 = pnand %p4564_p6, %p4558_p3 }
  0x13   :  { %4568 = shalt.err (!%p4565_p7)
}
  0x14   :  { %45 = dma.hbm_to_vmem [thread:$0]  %s5388_s1, 128, %s43_s22, [#allocation6]  }
  0x15   :  { %s5409_s23 = sld [smem:[#allocation12_spill]] }
  0x1b   :  { %s4569_s25 = scalar_lea.hbm %s5409_s23, 256 }
  0x1c   :  { %p4570_p8 = scmp.ne.s32.totalorder %s5409_s23, %s4569_s25  ;;  %p4573_p9 = scmp.lt.u32.totalorder %s4569_s25, %s5409_s23 }
  0x1e   :  { %p4575_p10 = pnand %p4573_p9, %p4570_p8 }
  0x20   :  { %4578 = shalt.err (!%p4575_p10)
}
  0x21   :  { %s4579_s30 = scalar_lea.vmem %s4742_s24, 256  ;;  %p4584_p12 = scmp.lt.s32.totalorder %s4742_s24, %s4742_s24 }
  0x22   :  { %p4580_p11 = scmp.ne.s32.totalorder %s4742_s24, %s4579_s30  ;;  %p4585_p13 = scmp.lt.s32.totalorder %s4579_s30, %s4579_s30 }
  0x24   :  { %p4586_p0 = por %p4585_p13, %p4584_p12 }
  0x26   :  { %p4587_p1 = pnand %p4586_p0, %p4580_p11 }
  0x28   :  { %4590 = shalt.err (!%p4587_p1)
}
  0x29   :  { %s4643_s1 = smov 128   ;;  %s4644_s22 = smov 8  }
  0x2a   :  { %35 = dma.hbm_to_vmem [thread:$0]  %s5409_s23, 256, %s4742_s24, [#allocation3], %s4643_s1, %s4643_s1, %s4644_s22  }
  0x2b   :  { %s4645_s18 = smov [#allocation7]   ;;  %s4591_s25 = scalar_lea.hbm %s5401_s14, 1024 }
  0x2c   :  { %s75_s19 = sshll.u32 %s4645_s18, 4  ;;  %p4592_p2 = scmp.ne.s32.totalorder %s5401_s14, %s4591_s25  ;;  %s76_s19 = int_to_ptr.vmem [resolvable:$true] %s75_s19 }
  0x2d   :  { %p4595_p3 = scmp.lt.u32.totalorder %s4591_s25, %s5401_s14 }
  0x2f   :  { %p4597_p4 = pnand %p4595_p3, %p4592_p2 }
  0x31   :  { %4600 = shalt.err (!%p4597_p4)
}
  0x32   :  { %s4601_s30 = scalar_lea.vmem %s76_s19, 1024  ;;  %p4606_p6 = scmp.lt.s32.totalorder %s76_s19, %s76_s19 }
  0x33   :  { %p4602_p5 = scmp.ne.s32.totalorder %s76_s19, %s4601_s30  ;;  %p4607_p7 = scmp.lt.s32.totalorder %s4601_s30, %s4601_s30 }
  0x35   :  { %p4608_p8 = por %p4607_p7, %p4606_p6 }
  0x37   :  { %p4609_p9 = pnand %p4608_p8, %p4602_p5 }
  0x39   :  { %4612 = shalt.err (!%p4609_p9)
}
  0x3a   :  { %s5405_s24 = smov 256   ;;  %s4647_s23 = smov 16  }
  0x3b   :  { %81 = dma.hbm_to_vmem [thread:$0]  %s5401_s14, 1024, %s76_s19, [#allocation6], %s5405_s24, %s5405_s24, %s4647_s23  }
  0x3c   :  { %4635 = dma.done.wait [#allocation3], 256  }
  0x3d   :  { %4636 = vsyncadd [#allocation3], 4294967040 }
  0x3e   :  { %4637 = dma.done.wait [#allocation6], 1152  }
  0x3f   :  { %4638 = vsyncadd [#allocation6], 4294966144  ;;  %v98_v0 = vld [vmem:[%s5389_s2] sm:$0xff]  ;;  %v99_v1 = vld [vmem:[%s5389_s2 + $0x8] sm:$0xff]  ;;  %vm109_vm0 = vcmask 261120   ;;  %v4648_v13 = vmov 0.0  }
  0x40   :  { %v100_v2 = vld [vmem:[%s5389_s2 + $0x10] sm:$0xff]  ;;  %v4363_v3 = vpack.c.bf16 %v99_v1, %v98_v0  ;;  %v101_v4 = vld [vmem:[%s5389_s2 + $0x18] sm:$0xff]  ;;  %v93_v5 = vld [vmem:[#allocation2] sm:$0xff]  ;;  %4110 = vmatprep.subr.mxu1 %v4648_v13  ;;  %s4649_s29 = smov 112   ;;  %s4650_s30 = smov 120   ;;  %vm4651_vm1 = vmmov 0  }
  0x41   :  { %v4367_v6 = vpack.c.bf16 %v101_v4, %v100_v2  ;;  %v95_v7 = vld [vmem:[#allocation5] sm:$0xff]  ;;  %v94_v9 = vld [vmem:[#allocation2 + $0x8] sm:$0xff]  ;;  %v3869_v11 = vld [vmem:[%s5390_s3] ss:$0 sm:$0xff]  ;;  %4112 = vmatprep.mubr.msk.f32.mxu1 %vm4651_vm1, %v4648_v13  ;;  %s4652_s1 = smov 104   ;;  %s4653_s0 = smov 96  }
  0x42   :  { %4364 = vmatprep.subr.bf16.mxu0 %v4363_v3  ;;  %v4801_v8 = vadd.f32 %v95_v7, %v93_v5  ;;  %v4805_v10 = vadd.f32 %v95_v7, %v94_v9  ;;  %vm207_vm2 = vcmask 64512   ;;  %s4654_s17 = smov 64   ;;  %s5406_s19 = smov 24   ;;  %vm1536_vm3 = vcmask 130048  }
  0x43   :  { %4366 = vmatpush3.bf16.msra.mxu0 %v4363_v3  ;;  %vm1539_vm4 = vcmask 195584   ;;  %vm1790_vm5 = vcmask 523264  }
  0x44   :  { %4368 = vmatprep.subr.bf16.mxu0 %v4367_v6  ;;  %4107 = vmatprep.mubr.msk.f32.mxu0 %vm109_vm0, %v4801_v8 }
  0x47   :  { %4370 = vmatpush3.bf16.msra.mxu0 %v4367_v6 }
  0x48   :  { %4120 = vmatprep.subr.mxu0 %v4648_v13 }
  0x4a   :  { %4108 = vmatmul.mubr.msk.f32.vlgmr.msra.gmra.mrb[0].mxu0 %vm109_vm0, %v4805_v10 }
  0x4b   :  { %4122 = vmatprep.mubr.msk.f32.mxu0 %vm4651_vm1, %v4648_v13 }
 0x11d   :  { %v4109_v12 = vpop.f32.mrb[0].mxu0 }
 0x11e   :  { %v182_v14 = vpop.f32.mrb[1].mxu0  ;;  %v4824_v16 = vadd.f32 %v4109_v12, %v3869_v11 }
 0x11f   :  { %v4814_v15 = vadd.f32 %v3869_v11, %v182_v14 }
 0x121   :  { %197 = vrot.lane.b32.xlu1 %v4814_v15, %s4649_s29  ;;  %193 = vrot.lane.b32.xlu0 %v4814_v15, %s4650_s30 }
 0x125   :  { %199 = vrot.lane.b32.xlu1 %v4824_v16, %s4649_s29  ;;  %195 = vrot.lane.b32.xlu0 %v4824_v16, %s4650_s30 }
 0x129   :  { %203 = vrot.lane.b32.xlu1 %v4824_v16, %s4652_s1  ;;  %201 = vrot.lane.b32.xlu0 %v4814_v15, %s4652_s1 }
 0x12d   :  { %282 = vrot.lane.b32.xlu1 %v4824_v16, %s4653_s0  ;;  %205 = vrot.lane.b32.xlu0 %v4814_v15, %s4653_s0 }
 0x193   :  { %v4838_v17 = vpop.permute.xlu1 %197  ;;  %v4840_v18 = vpop.permute.xlu0 %193 }
 0x194   :  { %358 = vrot.lane.b32.xlu0 %v4840_v18, %s4653_s0 }
 0x197   :  { %v4844_v19 = vpop.permute.xlu1 %199  ;;  %v4846_v20 = vpop.permute.xlu0 %195 }
 0x198   :  { %510 = vrot.lane.b32.xlu0 %v4838_v17, %s4653_s0  ;;  %434 = vrot.lane.b32.xlu1 %v4846_v20, %s4653_s0 }
 0x19b   :  { %v4852_v21 = vpop.permute.xlu0 %201  ;;  %v4858_v22 = vpop.permute.xlu1 %203 }
 0x19c   :  { %586 = vrot.lane.b32.xlu1 %v4844_v19, %s4653_s0  ;;  %662 = vrot.lane.b32.xlu0 %v4852_v21, %s4653_s0 }
 0x19f   :  { %v206_v23 = vpop.permute.xlu0 %205  ;;  %v283_v24 = vpop.permute.xlu1 %282 }
 0x1a0   :  { %738 = vrot.lane.b32.xlu1 %v4858_v22, %s4653_s0  ;;  %4111 = vmatpush3.xpose.msk.msra.mxu1 %vm207_vm2, %v206_v23 }
 0x1a1   :  { %4115 = vmatprep.subr.mxu1 %v4648_v13 }
 0x1a3   :  { %4113 = vmatmul.mubr.msk.f32.vlgmr.msra.gmra.mrb[0].mxu1 %vm207_vm2, %v4814_v15 }
 0x1a4   :  { %4116 = vmatpush3.xpose.msk.msra.mxu1 %vm207_vm2, %v283_v24  ;;  %4117 = vmatprep.mubr.msk.f32.mxu1 %vm4651_vm1, %v4648_v13 }
 0x1a5   :  { %4125 = vmatprep.subr.mxu1 %v4648_v13 }
 0x1a7   :  { %4118 = vmatmul.mubr.msk.f32.vlgmr.msra.gmra.mrb[2].mxu1 %vm207_vm2, %v4824_v16 }
 0x1a8   :  { %4127 = vmatprep.mubr.msk.f32.mxu1 %vm4651_vm1, %v4648_v13 }
 0x206   :  { %v359_v25 = vpop.permute.xlu0 %358 }
 0x207   :  { %4121 = vmatpush3.xpose.msk.msra.mxu0 %vm207_vm2, %v359_v25 }
 0x208   :  { %4130 = vmatprep.subr.mxu0 %v4648_v13 }
 0x20a   :  { %v435_v26 = vpop.permute.xlu1 %434  ;;  %4123 = vmatmul.mubr.msk.f32.vlgmr.msra.gmra.mrb[2].mxu0 %vm207_vm2, %v4840_v18  ;;  %v511_v27 = vpop.permute.xlu0 %510 }
 0x20b   :  { %4126 = vmatpush3.xpose.msk.msra.mxu1 %vm207_vm2, %v435_v26  ;;  %4131 = vmatpush3.xpose.msk.msra.mxu0 %vm207_vm2, %v511_v27 }
 0x20c   :  { %4132 = vmatprep.mubr.msk.f32.mxu0 %vm4651_vm1, %v4648_v13  ;;  %4135 = vmatprep.subr.mxu1 %v4648_v13 }
 0x20d   :  { %4140 = vmatprep.subr.mxu0 %v4648_v13 }
 0x20e   :  { %v587_v28 = vpop.permute.xlu1 %586  ;;  %4128 = vmatmul.mubr.msk.f32.vlgmr.msra.gmra.mrb[4].mxu1 %vm207_vm2, %v4846_v20  ;;  %4133 = vmatmul.mubr.msk.f32.vlgmr.msra.gmra.mrb[4].mxu0 %vm207_vm2, %v4838_v17  ;;  %v663_v29 = vpop.permute.xlu0 %662 }
 0x20f   :  { %4136 = vmatpush3.xpose.msk.msra.mxu1 %vm207_vm2, %v587_v28  ;;  %4141 = vmatpush3.xpose.msk.msra.mxu0 %vm207_vm2, %v663_v29 }
 0x210   :  { %4137 = vmatprep.mubr.msk.f32.mxu1 %vm4651_vm1, %v4648_v13  ;;  %4142 = vmatprep.mubr.msk.f32.mxu0 %vm4651_vm1, %v4648_v13 }
 0x211   :  { %4145 = vmatprep.subr.mxu1 %v4648_v13  ;;  %4150 = vmatprep.subr.mxu0 %v4648_v13 }
 0x212   :  { %v739_v30 = vpop.permute.xlu1 %738  ;;  %4138 = vmatmul.mubr.msk.f32.vlgmr.msra.gmra.mrb[6].mxu1 %vm207_vm2, %v4844_v19  ;;  %4143 = vmatmul.mubr.msk.f32.vlgmr.msra.gmra.mrb[6].mxu0 %vm207_vm2, %v4852_v21 }
 0x213   :  { %4146 = vmatpush3.xpose.msk.msra.mxu1 %vm207_vm2, %v739_v30  ;;  %4147 = vmatprep.mubr.msk.f32.mxu1 %vm4651_vm1, %v4648_v13 }
 0x214   :  { %4155 = vmatprep.subr.mxu1 %v4648_v13  ;;  %4152 = vmatprep.mubr.msk.f32.mxu0 %vm4651_vm1, %v4648_v13 }
 0x216   :  { %4148 = vmatmul.mubr.msk.f32.vlgmr.msra.gmra.mrb[8].mxu1 %vm207_vm2, %v4858_v22 }
 0x217   :  { %4157 = vmatprep.mubr.msk.f32.mxu1 %vm4651_vm1, %v4648_v13 }
 0x276   :  { %v278_v31 = vpop.f32.mrb[0].mxu1 }
 0x277   :  { %v4114_v32 = vpop.f32.mrb[1].mxu1  ;;  %v814_v33 = vsel %vm207_vm2, %v278_v31, -inf }
 0x278   :  { %815 = vmax.xlane.f32.xlu0 %v814_v33 }
 0x27a   :  { %v354_v34 = vpop.f32.mrb[2].mxu1 }
 0x27b   :  { %v4119_v35 = vpop.f32.mrb[3].mxu1  ;;  %v817_v36 = vsel %vm207_vm2, %v354_v34, -inf }
 0x27c   :  { %818 = vmax.xlane.f32.xlu1 %v817_v36 }
 0x2dd   :  { %v430_v37 = vpop.f32.mrb[2].mxu0 }
 0x2de   :  { %v4124_v38 = vpop.f32.mrb[3].mxu0  ;;  %v820_v39 = vsel %vm207_vm2, %v430_v37, -inf }
 0x2df   :  { %821 = vmax.xlane.f32.xlu0 %v820_v39 }
 0x2e1   :  { %v506_v40 = vpop.f32.mrb[4].mxu1  ;;  %v582_v41 = vpop.f32.mrb[4].mxu0 }
 0x2e2   :  { %v4129_v42 = vpop.f32.mrb[5].mxu1  ;;  %v4134_v43 = vpop.f32.mrb[5].mxu0  ;;  %v823_v44 = vsel %vm207_vm2, %v506_v40, -inf  ;;  %v826_v45 = vsel %vm207_vm2, %v582_v41, -inf }
 0x2e3   :  { %824 = vmax.xlane.f32.xlu0 %v823_v44  ;;  %827 = vmax.xlane.f32.xlu1 %v826_v45 }
 0x2e5   :  { %v658_v46 = vpop.f32.mrb[6].mxu1  ;;  %v734_v47 = vpop.f32.mrb[6].mxu0 }
 0x2e6   :  { %v4139_v48 = vpop.f32.mrb[7].mxu1  ;;  %v4144_v49 = vpop.f32.mrb[7].mxu0  ;;  %v829_v50 = vsel %vm207_vm2, %v658_v46, -inf  ;;  %v832_v51 = vsel %vm207_vm2, %v734_v47, -inf }
 0x2e7   :  { %830 = vmax.xlane.f32.xlu0 %v829_v50  ;;  %833 = vmax.xlane.f32.xlu1 %v832_v51 }
 0x2e9   :  { %v810_v52 = vpop.f32.mrb[8].mxu1 }
 0x2ea   :  { %v4149_v53 = vpop.f32.mrb[9].mxu1  ;;  %v835_v54 = vsel %vm207_vm2, %v810_v52, -inf }
 0x2eb   :  { %836 = vmax.xlane.f32.xlu0 %v835_v54 }
 0x2f8   :  { %902 = vrot.lane.b32.xlu1 %v4814_v15, %s4654_s17 }
 0x2fc   :  { %1054 = vrot.lane.b32.xlu1 %v4840_v18, %s4654_s17 }
 0x300   :  { %1130 = vrot.lane.b32.xlu1 %v4846_v20, %s4654_s17 }
 0x301   :  { %978 = vrot.lane.b32.xlu0 %v4824_v16, %s4654_s17 }
 0x304   :  { %1282 = vrot.lane.b32.xlu1 %v4844_v19, %s4654_s17 }
 0x305   :  { %1206 = vrot.lane.b32.xlu0 %v4838_v17, %s4654_s17  ;;  %v816_v57 = vpop.xlane.xlu0 %815 }
 0x306   :  { %v838_v58 = vsub.f32 %v278_v31, %v816_v57 }
 0x308   :  { %v846_v60 = vmul.f32 1.442695, %v838_v58 }
 0x309   :  { %v819_v55 = vpop.xlane.xlu1 %818 }
 0x30a   :  { %v839_v56 = vsub.f32 %v354_v34, %v819_v55 }
 0x30c   :  { %v848_v59 = vmul.f32 1.442695, %v839_v56 }
 0x30e   :  { %4467 = vpow2.f32 %v848_v59 }
 0x30f   :  { %4469 = vpow2.f32 %v846_v60 }
 0x318   :  { %v4930_v61 = vpop.eup %4467 }
 0x319   :  { %v865_v62 = vsel %vm207_vm2, %v4930_v61, 0.0  ;;  %v4934_v63 = vpop.eup %4469 }
 0x31a   :  { %v862_v0 = vsel %vm207_vm2, %v4934_v63, 0.0 }
 0x324   :  { %866 = vadd.xlane.f32.xlu0 %v865_v62 }
 0x328   :  { %863 = vadd.xlane.f32.xlu1 %v862_v0 }
 0x36c   :  { %v822_v1 = vpop.xlane.xlu0 %821 }
 0x36d   :  { %v840_v2 = vsub.f32 %v430_v37, %v822_v1 }
 0x36f   :  { %v850_v3 = vmul.f32 1.442695, %v840_v2 }
 0x370   :  { %v828_v4 = vpop.xlane.xlu1 %827  ;;  %v825_v5 = vpop.xlane.xlu0 %824 }
 0x371   :  { %4471 = vpow2.f32 %v850_v3  ;;  %v842_v6 = vsub.f32 %v582_v41, %v828_v4  ;;  %v841_v7 = vsub.f32 %v506_v40, %v825_v5 }
 0x373   :  { %v854_v9 = vmul.f32 1.442695, %v842_v6  ;;  %v852_v11 = vmul.f32 1.442695, %v841_v7  ;;  %v1542_v6 = vld [vmem:[%s5391_s4] sm:$0xff]  ;;  %v1543_v7 = vld [vmem:[%s5391_s4 + $0x8] sm:$0xff] }
 0x374   :  { %v834_v12 = vpop.xlane.xlu1 %833  ;;  %v831_v14 = vpop.xlane.xlu0 %830 }
 0x375   :  { %4473 = vpow2.f32 %v854_v9  ;;  %v844_v15 = vsub.f32 %v734_v47, %v834_v12  ;;  %v843_v16 = vsub.f32 %v658_v46, %v831_v14  ;;  %v4371_v9 = vpack.c.bf16 %v1543_v7, %v1542_v6  ;;  %v1545_v12 = vld [vmem:[%s5391_s4 + $0x18] sm:$0xff] }
 0x376   :  { %4475 = vpow2.f32 %v852_v11  ;;  %v1544_v11 = vld [vmem:[%s5391_s4 + $0x10] sm:$0xff] }
 0x377   :  { %v858_v17 = vmul.f32 1.442695, %v844_v15  ;;  %v856_v18 = vmul.f32 1.442695, %v843_v16  ;;  %v4375_v14 = vpack.c.bf16 %v1545_v12, %v1544_v11 }
 0x378   :  { %v903_v19 = vpop.permute.xlu1 %902  ;;  %v837_v20 = vpop.xlane.xlu0 %836 }
 0x379   :  { %4477 = vpow2.f32 %v858_v17  ;;  %v845_v23 = vsub.f32 %v810_v52, %v837_v20  ;;  %4151 = vmatpush3.msra.mxu0 %v903_v19 }
 0x37a   :  { %4479 = vpow2.f32 %v856_v18  ;;  %4160 = vmatprep.subr.mxu0 %v4648_v13 }
 0x37b   :  { %v4472_v24 = vpop.eup %4471  ;;  %v860_v25 = vmul.f32 1.442695, %v845_v23 }
 0x37c   :  { %v979_v26 = vpop.permute.xlu0 %978  ;;  %v868_v27 = vsel %vm207_vm2, %v4472_v24, 0.0  ;;  %v1055_v38 = vpop.permute.xlu1 %1054 }
 0x37d   :  { %4481 = vpow2.f32 %v860_v25  ;;  %869 = vadd.xlane.f32.xlu1 %v868_v27  ;;  %4156 = vmatpush3.msra.mxu1 %v979_v26 }
 0x37e   :  { %4165 = vmatprep.subr.mxu1 %v4648_v13 }
 0x37f   :  { %v4474_v28 = vpop.eup %4473 }
 0x380   :  { %v4476_v29 = vpop.eup %4475  ;;  %v874_v30 = vsel %vm207_vm2, %v4474_v28, 0.0  ;;  %v1131_v39 = vpop.permute.xlu1 %1130 }
 0x381   :  { %875 = vadd.xlane.f32.xlu1 %v874_v30  ;;  %v871_v31 = vsel %vm207_vm2, %v4476_v29, 0.0  ;;  %v1207_v40 = vpop.permute.xlu0 %1206 }
 0x382   :  { %872 = vadd.xlane.f32.xlu0 %v871_v31 }
 0x383   :  { %v4478_v32 = vpop.eup %4477 }
 0x384   :  { %v4480_v33 = vpop.eup %4479  ;;  %v880_v34 = vsel %vm207_vm2, %v4478_v32, 0.0  ;;  %v1283_v41 = vpop.permute.xlu1 %1282 }
 0x385   :  { %881 = vadd.xlane.f32.xlu1 %v880_v34  ;;  %v877_v35 = vsel %vm207_vm2, %v4480_v33, 0.0 }
 0x386   :  { %878 = vadd.xlane.f32.xlu0 %v877_v35 }
 0x387   :  { %v4945_v36 = vpop.eup %4481 }
 0x388   :  { %v883_v37 = vsel %vm207_vm2, %v4945_v36, 0.0 }
 0x38a   :  { %884 = vadd.xlane.f32.xlu0 %v883_v37 }
 0x396   :  { %1434 = vrot.lane.b32.xlu1 %v4858_v22, %s4654_s17 }
 0x3a0   :  { %1358 = vrot.lane.b32.xlu0 %v4852_v21, %s4654_s17 }
 0x3b1   :  { %v867_v42 = vpop.xlane.xlu0 %866 }
 0x3b2   :  { %4483 = vrcp.f32 %v867_v42 }
 0x3b5   :  { %v864_v43 = vpop.xlane.xlu1 %863 }
 0x3b6   :  { %4485 = vrcp.f32 %v864_v43 }
 0x3bc   :  { %v4484_v44 = vpop.eup %4483 }
 0x3bd   :  { %v895_v45 = vmul.f32 %v4484_v44, %v4930_v61 }
 0x3bf   :  { %4158 = vmatmul.mubr.msk.f32.vlgmr.msra.gmra.mrb[10].mxu1 %vm207_vm2, %v895_v45 }
 0x3c0   :  { %v4486_v46 = vpop.eup %4485  ;;  %4166 = vmatpush3.msra.mxu1 %v1131_v39  ;;  %4167 = vmatprep.mubr.msk.f32.mxu1 %vm4651_vm1, %v4648_v13 }
 0x3c1   :  { %v894_v21 = vmul.f32 %v4486_v46, %v4934_v63  ;;  %4175 = vmatprep.subr.mxu1 %v4648_v13 }
 0x3c3   :  { %4153 = vmatmul.mubr.msk.f32.vlgmr.msra.gmra.mrb[8].mxu0 %vm207_vm2, %v894_v21 }
 0x3c4   :  { %4161 = vmatpush3.msra.mxu0 %v1055_v38  ;;  %4162 = vmatprep.mubr.msk.f32.mxu0 %vm4651_vm1, %v4648_v13 }
 0x3c5   :  { %4170 = vmatprep.subr.mxu0 %v4648_v13 }
 0x40a   :  { %v870_v22 = vpop.xlane.xlu1 %869 }
 0x40b   :  { %4487 = vrcp.f32 %v870_v22 }
 0x40e   :  { %v876_v47 = vpop.xlane.xlu1 %875 }
 0x40f   :  { %4489 = vrcp.f32 %v876_v47  ;;  %v873_v48 = vpop.xlane.xlu0 %872 }
 0x410   :  { %4491 = vrcp.f32 %v873_v48 }
 0x412   :  { %v882_v49 = vpop.xlane.xlu1 %881 }
 0x413   :  { %4493 = vrcp.f32 %v882_v49  ;;  %v879_v50 = vpop.xlane.xlu0 %878 }
 0x414   :  { %4495 = vrcp.f32 %v879_v50 }
 0x415   :  { %v4488_v51 = vpop.eup %4487 }
 0x416   :  { %v896_v52 = vmul.f32 %v4488_v51, %v4472_v24  ;;  %v1435_v63 = vpop.permute.xlu1 %1434 }
 0x417   :  { %v885_v53 = vpop.xlane.xlu0 %884 }
 0x418   :  { %4497 = vrcp.f32 %v885_v53  ;;  %4163 = vmatmul.mubr.msk.f32.vlgmr.msra.gmra.mrb[10].mxu0 %vm207_vm2, %v896_v52 }
 0x419   :  { %v4490_v54 = vpop.eup %4489  ;;  %4171 = vmatpush3.msra.mxu0 %v1207_v40  ;;  %4172 = vmatprep.mubr.msk.f32.mxu0 %vm4651_vm1, %v4648_v13 }
 0x41a   :  { %v4492_v55 = vpop.eup %4491  ;;  %v898_v56 = vmul.f32 %v4490_v54, %v4474_v28  ;;  %4180 = vmatprep.subr.mxu0 %v4648_v13 }
 0x41b   :  { %v897_v57 = vmul.f32 %v4492_v55, %v4476_v29  ;;  %v1359_v58 = vpop.permute.xlu0 %1358 }
 0x41c   :  { %4173 = vmatmul.mubr.msk.f32.vlgmr.msra.gmra.mrb[12].mxu0 %vm207_vm2, %v898_v56 }
 0x41d   :  { %v4494_v59 = vpop.eup %4493  ;;  %4168 = vmatmul.mubr.msk.f32.vlgmr.msra.gmra.mrb[12].mxu1 %vm207_vm2, %v897_v57  ;;  %4181 = vmatpush3.msra.mxu0 %v1359_v58  ;;  %v1682_v57 = vld [vmem:[%s5395_s8 + $0x8] sm:$0xff] }
 0x41e   :  { %v4496_v60 = vpop.eup %4495  ;;  %v900_v61 = vmul.f32 %v4494_v59, %v4478_v32  ;;  %4176 = vmatpush3.msra.mxu1 %v1283_v41  ;;  %4177 = vmatprep.mubr.msk.f32.mxu1 %vm4651_vm1, %v4648_v13  ;;  %v3896_v41 = vld [vmem:[%s5392_s5] ss:$0 sm:$0xff]  ;;  %v1683_v59 = vld [vmem:[%s5395_s8 + $0x10] sm:$0xff] }
 0x41f   :  { %v899_v62 = vmul.f32 %v4496_v60, %v4480_v33  ;;  %4182 = vmatprep.mubr.msk.f32.mxu0 %vm4651_vm1, %v4648_v13  ;;  %4185 = vmatprep.subr.mxu1 %v4648_v13  ;;  %v1684_v60 = vld [vmem:[%s5395_s8 + $0x18] sm:$0xff] }
 0x420   :  { %4183 = vmatmul.mubr.msk.f32.vlgmr.msra.gmra.mrb[14].mxu0 %vm207_vm2, %v900_v61  ;;  %4372 = vmatprep.subr.bf16.mxu0 %v4371_v9  ;;  %v4383_v61 = vpack.c.bf16 %v1684_v60, %v1683_v59 }
 0x421   :  { %4178 = vmatmul.mubr.msk.f32.vlgmr.msra.gmra.mrb[14].mxu1 %vm207_vm2, %v899_v62  ;;  %4374 = vmatpush3.bf16.msra.mxu0 %v4371_v9  ;;  %v1775_v62 = vld [vmem:[%s5397_s10] sm:$0xff] }
 0x422   :  { %v4498_v0 = vpop.eup %4497  ;;  %4186 = vmatpush3.msra.mxu1 %v1435_v63  ;;  %4187 = vmatprep.mubr.msk.f32.mxu1 %vm4651_vm1, %v4648_v13  ;;  %v1776_v63 = vld [vmem:[%s5397_s10 + $0x8] sm:$0xff] }
 0x423   :  { %v901_v1 = vmul.f32 %v4498_v0, %v4945_v36  ;;  %4376 = vmatprep.subr.bf16.mxu0 %v4375_v14  ;;  %v1777_v0 = vld [vmem:[%s5397_s10 + $0x10] sm:$0xff] }
 0x425   :  { %4188 = vmatmul.mubr.msk.f32.vlgmr.msra.gmra.mrb[16].mxu1 %vm207_vm2, %v901_v1  ;;  %4378 = vmatpush3.bf16.msra.mxu0 %v4375_v14  ;;  %v4387_v1 = vpack.c.bf16 %v1776_v63, %v1775_v62 }
 0x427   :  { %4388 = vmatprep.subr.bf16.mxu0 %v4387_v1 }
 0x492   :  { %v1050_v2 = vpop.f32.mrb[10].mxu1 }
 0x493   :  { %v4159_v3 = vpop.f32.mrb[11].mxu1 }
 0x496   :  { %v974_v4 = vpop.f32.mrb[8].mxu0 }
 0x497   :  { %v4154_v5 = vpop.f32.mrb[9].mxu0 }
 0x498   :  { %v1780_v5 = vld [vmem:[%s5397_s10 + $0x28] sm:$0xff] }
 0x4eb   :  { %v1126_v15 = vpop.f32.mrb[10].mxu0 }
 0x4ec   :  { %v4164_v16 = vpop.f32.mrb[11].mxu0  ;;  %1512 = vrot.lane.b32.xlu0 %v1126_v15, %s4644_s22 }
 0x4ef   :  { %v1278_v17 = vpop.f32.mrb[12].mxu0 }
 0x4f0   :  { %v1202_v18 = vpop.f32.mrb[12].mxu1  ;;  %1520 = vrot.lane.b32.xlu0 %v1278_v17, %s4647_s23  ;;  %v4174_v19 = vpop.f32.mrb[13].mxu0  ;;  %v3899_v17 = vld [vmem:[%s5393_s6] ss:$0 sm:$0xff] }
 0x4f1   :  { %1514 = vrot.lane.b32.xlu1 %v1202_v18, %s4644_s22  ;;  %v4169_v20 = vpop.f32.mrb[13].mxu1  ;;  %v3900_v19 = vld [vmem:[%s5394_s7] ss:$0 sm:$0xff] }
 0x4f3   :  { %v1430_v23 = vpop.f32.mrb[14].mxu0 }
 0x4f4   :  { %v1354_v24 = vpop.f32.mrb[14].mxu1  ;;  %1528 = vrot.lane.b32.xlu0 %v1430_v23, %s5406_s19  ;;  %v4184_v25 = vpop.f32.mrb[15].mxu0 }
 0x4f5   :  { %1522 = vrot.lane.b32.xlu1 %v1354_v24, %s4647_s23  ;;  %v4179_v26 = vpop.f32.mrb[15].mxu1 }
 0x4f8   :  { %v1506_v27 = vpop.f32.mrb[16].mxu1 }
 0x4f9   :  { %1530 = vrot.lane.b32.xlu1 %v1506_v27, %s5406_s19  ;;  %v4189_v28 = vpop.f32.mrb[17].mxu1 }
 0x4fa   :  { %v1781_v28 = vld [vmem:[%s5397_s10 + $0x30] sm:$0xff] }
 0x55e   :  { %v1513_v29 = vpop.permute.xlu0 %1512 }
 0x55f   :  { %v1534_v32 = vsel %vm207_vm2, %v974_v4, %v1513_v29  ;;  %v1779_v4 = vld [vmem:[%s5397_s10 + $0x20] sm:$0xff]  ;;  %v1782_v29 = vld [vmem:[%s5397_s10 + $0x38] sm:$0xff] }
 0x560   :  { %v4395_v6 = vpack.c.bf16 %v1780_v5, %v1779_v4 }
 0x562   :  { %v1521_v30 = vpop.permute.xlu0 %1520 }
 0x563   :  { %v1515_v31 = vpop.permute.xlu1 %1514  ;;  %v1537_v33 = vsel %vm1536_vm3, %v1534_v32, %v1521_v30  ;;  %v4399_v30 = vpack.c.bf16 %v1782_v29, %v1781_v28 }
 0x564   :  { %v1535_v37 = vsel %vm207_vm2, %v1050_v2, %v1515_v31  ;;  %v1778_v2 = vld [vmem:[%s5397_s10 + $0x18] sm:$0xff]  ;;  %v3901_v31 = vld [vmem:[%s5396_s9] ss:$0 sm:$0xff] }
 0x565   :  { %v4391_v3 = vpack.c.bf16 %v1778_v2, %v1777_v0  ;;  %v3907_v2 = vld [vmem:[%s5399_s12] ss:$0 sm:$0xff] }
 0x566   :  { %v1529_v34 = vpop.permute.xlu0 %1528 }
 0x567   :  { %v1523_v35 = vpop.permute.xlu1 %1522  ;;  %v1540_v36 = vsel %vm1539_vm4, %v1537_v33, %v1529_v34 }
 0x568   :  { %4198 = vmatprep.mubr.msk.f32.mxu0 %vm109_vm0, %v1540_v36  ;;  %v1538_v38 = vsel %vm1536_vm3, %v1535_v37, %v1523_v35 }
 0x56b   :  { %v1531_v39 = vpop.permute.xlu1 %1530 }
 0x56c   :  { %v1541_v40 = vsel %vm1539_vm4, %v1538_v38, %v1531_v39  ;;  %v3904_v38 = vld [vmem:[%s5398_s11] ss:$0 sm:$0xff] }
 0x56d   :  { %4199 = vmatmul.mubr.msk.f32.vlgmr.msra.gmra.mrb[16].mxu0 %vm109_vm0, %v1541_v40 }
 0x56e   :  { %4390 = vmatpush3.bf16.msra.mxu0 %v4387_v1 }
 0x56f   :  { %4392 = vmatprep.subr.bf16.mxu0 %v4391_v3 }
 0x572   :  { %4394 = vmatpush3.bf16.msra.mxu0 %v4391_v3 }
 0x573   :  { %4396 = vmatprep.subr.bf16.mxu0 %v4395_v6 }
 0x576   :  { %4398 = vmatpush3.bf16.msra.mxu0 %v4395_v6  ;;  %v3908_v6 = vld [vmem:[%s5400_s13] ss:$0 sm:$0xff] }
 0x577   :  { %4400 = vmatprep.subr.bf16.mxu0 %v4399_v30 }
 0x57a   :  { %4402 = vmatpush3.bf16.msra.mxu0 %v4399_v30 }
 0x57b   :  { %4252 = vmatprep.subr.mxu0 %v4648_v13 }
 0x640   :  { %v4200_v42 = vpop.f32.mrb[16].mxu0 }
 0x641   :  { %v1631_v43 = vadd.f32 %v4200_v42, %v3896_v41  ;;  %v1625_v44 = vpop.f32.mrb[17].mxu0 }
 0x642   :  { %v1626_v45 = vadd.f32 %v3896_v41, %v1625_v44 }
 0x643   :  { %v1635_v46 = vadd.f32 %v1631_v43, %v4805_v10 }
 0x644   :  { %v1634_v21 = vadd.f32 %v1626_v45, %v4801_v8  ;;  %v1681_v8 = vld [vmem:[%s5395_s8] sm:$0xff] }
 0x645   :  { %v1641_v22 = vsel %vm109_vm0, %v1635_v46, 0.0  ;;  %v4379_v58 = vpack.c.bf16 %v1682_v57, %v1681_v8  ;;  %v3911_v8 = vld [vmem:[%s5389_s2 + $0x30] sm:$0xff]  ;;  %v3912_v57 = vld [vmem:[%s5389_s2 + $0x38] sm:$0xff] }
 0x646   :  { %1642 = vadd.xlane.f32.xlu1 %v1641_v22  ;;  %v1638_v47 = vsel %vm109_vm0, %v1634_v21, 0.0 }
 0x647   :  { %1639 = vadd.xlane.f32.xlu0 %v1638_v47  ;;  %4380 = vmatprep.subr.bf16.mxu1 %v4379_v58 }
 0x648   :  { %4382 = vmatpush3.bf16.msra.mxu1 %v4379_v58  ;;  %v4407_v58 = vpack.c.bf16 %v3912_v57, %v3911_v8 }
 0x649   :  { %4384 = vmatprep.subr.bf16.mxu1 %v4383_v61 }
 0x64c   :  { %4386 = vmatpush3.bf16.msra.mxu1 %v4383_v61 }
 0x6d3   :  { %v1643_v48 = vpop.xlane.xlu1 %1642 }
 0x6d4   :  { %v1646_v49 = vmul.f32 0.03125, %v1643_v48  ;;  %v1640_v50 = vpop.xlane.xlu0 %1639 }
 0x6d5   :  { %v1645_v51 = vmul.f32 0.03125, %v1640_v50 }
 0x6d6   :  { %v1648_v52 = vsub.f32 %v1635_v46, %v1646_v49 }
 0x6d7   :  { %v1647_v53 = vsub.f32 %v1634_v21, %v1645_v51 }
 0x6d8   :  { %v1650_v56 = vmul.f32 %v1648_v52, %v1648_v52 }
 0x6d9   :  { %v1649_v54 = vmul.f32 %v1647_v53, %v1647_v53 }
 0x6da   :  { %v1654_v10 = vsel %vm109_vm0, %v1650_v56, 0.0  ;;  %v3910_v56 = vld [vmem:[%s5389_s2 + $0x28] sm:$0xff] }
 0x6db   :  { %v1651_v55 = vsel %vm109_vm0, %v1649_v54, 0.0 }
 0x6dc   :  { %1652 = vadd.xlane.f32.xlu0 %v1651_v55  ;;  %v3909_v55 = vld [vmem:[%s5389_s2 + $0x20] sm:$0xff] }
 0x6e0   :  { %1655 = vadd.xlane.f32.xlu0 %v1654_v10  ;;  %v4403_v10 = vpack.c.bf16 %v3910_v56, %v3909_v55 }
 0x6e2   :  { %4404 = vmatprep.subr.bf16.mxu1 %v4403_v10 }
 0x769   :  { %v1653_v7 = vpop.xlane.xlu0 %1652 }
 0x76a   :  { %v1657_v9 = vmul.f32 0.03125, %v1653_v7 }
 0x76c   :  { %v1659_v11 = vadd.f32 1e-05, %v1657_v9 }
 0x76d   :  { %v1656_v12 = vpop.xlane.xlu0 %1655 }
 0x76e   :  { %4499 = vrsqrt.f32 %v1659_v11  ;;  %v1658_v14 = vmul.f32 0.03125, %v1656_v12 }
 0x770   :  { %v1660_v15 = vadd.f32 1e-05, %v1658_v14  ;;  %v3914_v14 = vld [vmem:[%s5390_s3 + $0x1] ss:$0 sm:$0xff] }
 0x772   :  { %4501 = vrsqrt.f32 %v1660_v15 }
 0x778   :  { %v4500_v16 = vpop.eup %4499 }
 0x779   :  { %v1663_v18 = vmul.f32 %v4500_v16, %v1647_v53 }
 0x77b   :  { %v1671_v20 = vmul.f32 %v3899_v17, %v1663_v18 }
 0x77c   :  { %v4502_v23 = vpop.eup %4501 }
 0x77d   :  { %v1664_v24 = vmul.f32 %v4502_v23, %v1648_v52  ;;  %v1679_v25 = vadd.f32 %v3900_v19, %v1671_v20 }
 0x77f   :  { %v1672_v26 = vmul.f32 %v3899_v17, %v1664_v24  ;;  %4209 = vmatprep.mubr.msk.f32.mxu1 %vm109_vm0, %v1679_v25 }
 0x781   :  { %v1680_v27 = vadd.f32 %v3900_v19, %v1672_v26 }
 0x783   :  { %4210 = vmatmul.mubr.msk.f32.vlgmr.msra.gmra.mrb[18].mxu1 %vm109_vm0, %v1680_v27 }
 0x784   :  { %4406 = vmatpush3.bf16.msra.mxu1 %v4403_v10 }
 0x785   :  { %4408 = vmatprep.subr.bf16.mxu1 %v4407_v58 }
 0x788   :  { %4410 = vmatpush3.bf16.msra.mxu1 %v4407_v58 }
 0x789   :  { %4242 = vmatprep.subr.mxu1 %v4648_v13 }
 0x856   :  { %v4211_v32 = vpop.f32.mrb[18].mxu1 }
 0x857   :  { %v1770_v33 = vadd.f32 %v4211_v32, %v3901_v31  ;;  %v1764_v34 = vpop.f32.mrb[19].mxu1 }
 0x858   :  { %v1765_v35 = vadd.f32 %v3901_v31, %v1764_v34 }
 0x859   :  { %v1774_v37 = vmax.f32 %v1770_v33, 0.0 }
 0x85a   :  { %v1773_v36 = vmax.f32 %v1765_v35, 0.0 }
 0x85c   :  { %4228 = vmatprep.mubr.msk.f32.mxu0 %vm1790_vm5, %v1773_v36 }
 0x85d   :  { %4229 = vmatmul.mubr.msk.f32.vlgmr.msra.gmra.mrb[18].mxu0 %vm1790_vm5, %v1774_v37 }
 0x85e   :  { %4254 = vmatprep.mubr.msk.f32.mxu0 %vm4651_vm1, %v4648_v13 }
 0x930   :  { %v4230_v39 = vpop.f32.mrb[18].mxu0 }
 0x931   :  { %v1869_v40 = vadd.f32 %v4230_v39, %v3904_v38  ;;  %v1863_v41 = vpop.f32.mrb[19].mxu0 }
 0x932   :  { %v1864_v42 = vadd.f32 %v3904_v38, %v1863_v41 }
 0x933   :  { %v1873_v43 = vadd.f32 %v1869_v40, %v1680_v27 }
 0x934   :  { %v1872_v44 = vadd.f32 %v1864_v42, %v1679_v25 }
 0x935   :  { %v1879_v45 = vsel %vm109_vm0, %v1873_v43, 0.0 }
 0x936   :  { %1880 = vadd.xlane.f32.xlu0 %v1879_v45  ;;  %v1876_v46 = vsel %vm109_vm0, %v1872_v44, 0.0 }
 0x937   :  { %1877 = vadd.xlane.f32.xlu1 %v1876_v46 }
 0x9c3   :  { %v1881_v21 = vpop.xlane.xlu0 %1880 }
 0x9c4   :  { %v1883_v22 = vmul.f32 0.03125, %v1881_v21  ;;  %v1878_v47 = vpop.xlane.xlu1 %1877 }
 0x9c5   :  { %v1882_v48 = vmul.f32 0.03125, %v1878_v47 }
 0x9c6   :  { %v1885_v49 = vsub.f32 %v1873_v43, %v1883_v22 }
 0x9c7   :  { %v1884_v50 = vsub.f32 %v1872_v44, %v1882_v48 }
 0x9c8   :  { %v1887_v51 = vmul.f32 %v1885_v49, %v1885_v49 }
 0x9c9   :  { %v1886_v52 = vmul.f32 %v1884_v50, %v1884_v50 }
 0x9ca   :  { %v1891_v53 = vsel %vm109_vm0, %v1887_v51, 0.0 }
 0x9cb   :  { %1892 = vadd.xlane.f32.xlu0 %v1891_v53  ;;  %v1888_v54 = vsel %vm109_vm0, %v1886_v52, 0.0 }
 0x9cc   :  { %1889 = vadd.xlane.f32.xlu1 %v1888_v54 }
 0xa58   :  { %v1893_v59 = vpop.xlane.xlu0 %1892 }
 0xa59   :  { %v1895_v60 = vmul.f32 0.03125, %v1893_v59  ;;  %v1890_v61 = vpop.xlane.xlu1 %1889 }
 0xa5a   :  { %v1894_v62 = vmul.f32 0.03125, %v1890_v61 }
 0xa5b   :  { %v1897_v63 = vadd.f32 1e-05, %v1895_v60 }
 0xa5c   :  { %v1896_v0 = vadd.f32 1e-05, %v1894_v62 }
 0xa5d   :  { %4503 = vrsqrt.f32 %v1897_v63 }
 0xa5e   :  { %4505 = vrsqrt.f32 %v1896_v0 }
 0xa67   :  { %v4504_v1 = vpop.eup %4503 }
 0xa68   :  { %v4506_v3 = vpop.eup %4505  ;;  %v1901_v4 = vmul.f32 %v4504_v1, %v1885_v49 }
 0xa69   :  { %v1900_v5 = vmul.f32 %v4506_v3, %v1884_v50 }
 0xa6a   :  { %v1909_v7 = vmul.f32 %v3907_v2, %v1901_v4 }
 0xa6b   :  { %v1908_v9 = vmul.f32 %v3907_v2, %v1900_v5 }
 0xa6c   :  { %v5095_v12 = vadd.f32 %v3908_v6, %v1909_v7 }
 0xa6d   :  { %v5093_v11 = vadd.f32 %v3908_v6, %v1908_v9 }
 0xa6f   :  { %4239 = vmatprep.mubr.msk.f32.mxu1 %vm109_vm0, %v5093_v11 }
 0xa70   :  { %4240 = vmatmul.mubr.msk.f32.vlgmr.msra.gmra.mrb[20].mxu1 %vm109_vm0, %v5095_v12 }
 0xa71   :  { %4244 = vmatprep.mubr.msk.f32.mxu1 %vm4651_vm1, %v4648_v13 }
 0xb43   :  { %v4241_v15 = vpop.f32.mrb[20].mxu1 }
 0xb44   :  { %v5106_v16 = vadd.f32 %v4241_v15, %v3914_v14  ;;  %v2003_v17 = vpop.f32.mrb[21].mxu1 }
 0xb45   :  { %v5108_v18 = vadd.f32 %v3914_v14, %v2003_v17 }
 0xb46   :  { %2016 = vrot.lane.b32.xlu0 %v5106_v16, %s4650_s30 }
 0xb47   :  { %2014 = vrot.lane.b32.xlu1 %v5108_v18, %s4650_s30 }
 0xb4a   :  { %2022 = vrot.lane.b32.xlu0 %v5108_v18, %s4652_s1 }
 0xb4b   :  { %2018 = vrot.lane.b32.xlu1 %v5108_v18, %s4649_s29 }
 0xb4e   :  { %2026 = vrot.lane.b32.xlu0 %v5108_v18, %s4653_s0 }
 0xb4f   :  { %2020 = vrot.lane.b32.xlu1 %v5106_v16, %s4649_s29 }
 0xb53   :  { %2024 = vrot.lane.b32.xlu1 %v5106_v16, %s4652_s1 }
 0xb57   :  { %2102 = vrot.lane.b32.xlu1 %v5106_v16, %s4653_s0 }
 0xbb8   :  { %v5126_v19 = vpop.permute.xlu0 %2016 }
 0xbb9   :  { %2254 = vrot.lane.b32.xlu1 %v5126_v19, %s4653_s0  ;;  %v5130_v20 = vpop.permute.xlu1 %2014 }
 0xbba   :  { %2178 = vrot.lane.b32.xlu0 %v5130_v20, %s4653_s0 }
 0xbbc   :  { %v5134_v23 = vpop.permute.xlu0 %2022 }
 0xbbd   :  { %v5136_v24 = vpop.permute.xlu1 %2018 }
 0xbbe   :  { %2330 = vrot.lane.b32.xlu0 %v5136_v24, %s4653_s0 }
 0xbc0   :  { %v2027_v25 = vpop.permute.xlu0 %2026 }
 0xbc1   :  { %4243 = vmatpush3.xpose.msk.msra.mxu1 %vm207_vm2, %v2027_v25  ;;  %v5141_v26 = vpop.permute.xlu1 %2020 }
 0xbc2   :  { %2482 = vrot.lane.b32.xlu0 %v5134_v23, %s4653_s0  ;;  %2406 = vrot.lane.b32.xlu1 %v5141_v26, %s4653_s0 }
 0xbc3   :  { %4247 = vmatprep.subr.mxu1 %v4648_v13 }
 0xbc4   :  { %4245 = vmatmul.mubr.msk.f32.vlgmr.msra.gmra.mrb[22].mxu1 %vm207_vm2, %v5108_v18 }
 0xbc5   :  { %v5150_v27 = vpop.permute.xlu1 %2024  ;;  %4249 = vmatprep.mubr.msk.f32.mxu1 %vm4651_vm1, %v4648_v13 }
 0xbc6   :  { %2558 = vrot.lane.b32.xlu1 %v5150_v27, %s4653_s0 }
 0xbc9   :  { %v2103_v28 = vpop.permute.xlu1 %2102 }
 0xbca   :  { %4248 = vmatpush3.xpose.msk.msra.mxu1 %vm207_vm2, %v2103_v28 }
 0xbcb   :  { %4257 = vmatprep.subr.mxu1 %v4648_v13 }
 0xbcd   :  { %4250 = vmatmul.mubr.msk.f32.vlgmr.msra.gmra.mrb[24].mxu1 %vm207_vm2, %v5106_v16 }
 0xbce   :  { %4259 = vmatprep.mubr.msk.f32.mxu1 %vm4651_vm1, %v4648_v13 }
 0xc2b   :  { %v2255_v29 = vpop.permute.xlu1 %2254 }
 0xc2c   :  { %v2179_v30 = vpop.permute.xlu0 %2178  ;;  %4258 = vmatpush3.xpose.msk.msra.mxu1 %vm207_vm2, %v2255_v29 }
 0xc2d   :  { %4253 = vmatpush3.xpose.msk.msra.mxu0 %vm207_vm2, %v2179_v30  ;;  %4267 = vmatprep.subr.mxu1 %v4648_v13 }
 0xc2e   :  { %4262 = vmatprep.subr.mxu0 %v4648_v13 }
 0xc2f   :  { %4260 = vmatmul.mubr.msk.f32.vlgmr.msra.gmra.mrb[26].mxu1 %vm207_vm2, %v5126_v19 }
 0xc30   :  { %4255 = vmatmul.mubr.msk.f32.vlgmr.msra.gmra.mrb[20].mxu0 %vm207_vm2, %v5130_v20  ;;  %v2331_v31 = vpop.permute.xlu0 %2330  ;;  %4269 = vmatprep.mubr.msk.f32.mxu1 %vm4651_vm1, %v4648_v13 }
 0xc31   :  { %4263 = vmatpush3.xpose.msk.msra.mxu0 %vm207_vm2, %v2331_v31  ;;  %4264 = vmatprep.mubr.msk.f32.mxu0 %vm4651_vm1, %v4648_v13 }
 0xc32   :  { %4272 = vmatprep.subr.mxu0 %v4648_v13 }
 0xc34   :  { %4265 = vmatmul.mubr.msk.f32.vlgmr.msra.gmra.mrb[22].mxu0 %vm207_vm2, %v5136_v24  ;;  %v2483_v32 = vpop.permute.xlu0 %2482  ;;  %v2407_v33 = vpop.permute.xlu1 %2406 }
 0xc35   :  { %4268 = vmatpush3.xpose.msk.msra.mxu1 %vm207_vm2, %v2407_v33  ;;  %4273 = vmatpush3.xpose.msk.msra.mxu0 %vm207_vm2, %v2483_v32 }
 0xc36   :  { %4274 = vmatprep.mubr.msk.f32.mxu0 %vm4651_vm1, %v4648_v13  ;;  %4277 = vmatprep.subr.mxu1 %v4648_v13 }
 0xc37   :  { %4282 = vmatprep.subr.mxu0 %v4648_v13 }
 0xc38   :  { %4270 = vmatmul.mubr.msk.f32.vlgmr.msra.gmra.mrb[28].mxu1 %vm207_vm2, %v5141_v26  ;;  %4275 = vmatmul.mubr.msk.f32.vlgmr.msra.gmra.mrb[24].mxu0 %vm207_vm2, %v5134_v23  ;;  %v2559_v34 = vpop.permute.xlu1 %2558 }
 0xc39   :  { %4278 = vmatpush3.xpose.msk.msra.mxu1 %vm207_vm2, %v2559_v34  ;;  %4279 = vmatprep.mubr.msk.f32.mxu1 %vm4651_vm1, %v4648_v13 }
 0xc3a   :  { %4287 = vmatprep.subr.mxu1 %v4648_v13  ;;  %4284 = vmatprep.mubr.msk.f32.mxu0 %vm4651_vm1, %v4648_v13 }
 0xc3c   :  { %4280 = vmatmul.mubr.msk.f32.vlgmr.msra.gmra.mrb[30].mxu1 %vm207_vm2, %v5150_v27 }
 0xc3d   :  { %4289 = vmatprep.mubr.msk.f32.mxu1 %vm4651_vm1, %v4648_v13 }
 0xc97   :  { %v2098_v35 = vpop.f32.mrb[22].mxu1 }
 0xc98   :  { %v4246_v36 = vpop.f32.mrb[23].mxu1  ;;  %v2634_v37 = vsel %vm207_vm2, %v2098_v35, -inf }
 0xc99   :  { %2635 = vmax.xlane.f32.xlu0 %v2634_v37 }
 0xca0   :  { %v2174_v38 = vpop.f32.mrb[24].mxu1 }
 0xca1   :  { %v4251_v39 = vpop.f32.mrb[25].mxu1  ;;  %v2637_v40 = vsel %vm207_vm2, %v2174_v38, -inf }
 0xca2   :  { %2638 = vmax.xlane.f32.xlu1 %v2637_v40 }
 0xd02   :  { %v2326_v41 = vpop.f32.mrb[26].mxu1 }
 0xd03   :  { %v2250_v42 = vpop.f32.mrb[20].mxu0  ;;  %v4261_v43 = vpop.f32.mrb[27].mxu1  ;;  %v2643_v47 = vsel %vm207_vm2, %v2326_v41, -inf }
 0xd04   :  { %v4256_v44 = vpop.f32.mrb[21].mxu0  ;;  %v2640_v45 = vsel %vm207_vm2, %v2250_v42, -inf }
 0xd05   :  { %2641 = vmax.xlane.f32.xlu0 %v2640_v45 }
 0xd07   :  { %v2402_v46 = vpop.f32.mrb[22].mxu0 }
 0xd08   :  { %v4266_v21 = vpop.f32.mrb[23].mxu0  ;;  %v2646_v22 = vsel %vm207_vm2, %v2402_v46, -inf }
 0xd09   :  { %2647 = vmax.xlane.f32.xlu1 %v2646_v22  ;;  %2644 = vmax.xlane.f32.xlu0 %v2643_v47 }
 0xd0b   :  { %v2478_v48 = vpop.f32.mrb[28].mxu1  ;;  %v2554_v49 = vpop.f32.mrb[24].mxu0 }
 0xd0c   :  { %v4271_v50 = vpop.f32.mrb[29].mxu1  ;;  %v4276_v51 = vpop.f32.mrb[25].mxu0  ;;  %v2652_v52 = vsel %vm207_vm2, %v2554_v49, -inf  ;;  %v2649_v53 = vsel %vm207_vm2, %v2478_v48, -inf }
 0xd0d   :  { %2653 = vmax.xlane.f32.xlu1 %v2652_v52  ;;  %2650 = vmax.xlane.f32.xlu0 %v2649_v53 }
 0xd0f   :  { %v2630_v54 = vpop.f32.mrb[30].mxu1 }
 0xd10   :  { %v4281_v55 = vpop.f32.mrb[31].mxu1  ;;  %v2655_v56 = vsel %vm207_vm2, %v2630_v54, -inf }
 0xd11   :  { %2656 = vmax.xlane.f32.xlu0 %v2655_v56 }
 0xd1e   :  { %2722 = vrot.lane.b32.xlu1 %v5108_v18, %s4654_s17 }
 0xd22   :  { %2874 = vrot.lane.b32.xlu1 %v5130_v20, %s4654_s17 }
 0xd26   :  { %2950 = vrot.lane.b32.xlu1 %v5126_v19, %s4654_s17  ;;  %v2636_v57 = vpop.xlane.xlu0 %2635 }
 0xd27   :  { %2798 = vrot.lane.b32.xlu0 %v5106_v16, %s4654_s17  ;;  %v2658_v58 = vsub.f32 %v2098_v35, %v2636_v57 }
 0xd29   :  { %v2666_v60 = vmul.f32 1.442695, %v2658_v58 }
 0xd2a   :  { %3102 = vrot.lane.b32.xlu1 %v5141_v26, %s4654_s17 }
 0xd2b   :  { %3026 = vrot.lane.b32.xlu0 %v5136_v24, %s4654_s17 }
 0xd2f   :  { %v2639_v10 = vpop.xlane.xlu1 %2638 }
 0xd30   :  { %v2659_v8 = vsub.f32 %v2174_v38, %v2639_v10 }
 0xd32   :  { %v2668_v59 = vmul.f32 1.442695, %v2659_v8 }
 0xd34   :  { %4507 = vpow2.f32 %v2668_v59 }
 0xd35   :  { %4509 = vpow2.f32 %v2666_v60 }
 0xd3e   :  { %v5218_v61 = vpop.eup %4507 }
 0xd3f   :  { %v2685_v62 = vsel %vm207_vm2, %v5218_v61, 0.0  ;;  %v5222_v63 = vpop.eup %4509 }
 0xd40   :  { %v2682_v0 = vsel %vm207_vm2, %v5222_v63, 0.0 }
 0xd4a   :  { %2686 = vadd.xlane.f32.xlu0 %v2685_v62 }
 0xd4e   :  { %2683 = vadd.xlane.f32.xlu1 %v2682_v0 }
 0xd92   :  { %v2642_v1 = vpop.xlane.xlu0 %2641 }
 0xd93   :  { %v2660_v2 = vsub.f32 %v2250_v42, %v2642_v1 }
 0xd95   :  { %v2670_v3 = vmul.f32 1.442695, %v2660_v2 }
 0xd96   :  { %v2645_v4 = vpop.xlane.xlu0 %2644  ;;  %v2648_v5 = vpop.xlane.xlu1 %2647 }
 0xd97   :  { %4511 = vpow2.f32 %v2670_v3  ;;  %v2661_v6 = vsub.f32 %v2326_v41, %v2645_v4  ;;  %v2662_v7 = vsub.f32 %v2402_v46, %v2648_v5 }
 0xd99   :  { %v2672_v9 = vmul.f32 1.442695, %v2661_v6  ;;  %v2674_v14 = vmul.f32 1.442695, %v2662_v7  ;;  %v3941_v6 = vld [vmem:[%s5391_s4 + $0x20] sm:$0xff]  ;;  %v3942_v7 = vld [vmem:[%s5391_s4 + $0x28] sm:$0xff] }
 0xd9a   :  { %v2651_v15 = vpop.xlane.xlu0 %2650  ;;  %v2654_v16 = vpop.xlane.xlu1 %2653 }
 0xd9b   :  { %4513 = vpow2.f32 %v2672_v9  ;;  %v2663_v17 = vsub.f32 %v2478_v48, %v2651_v15  ;;  %v2664_v18 = vsub.f32 %v2554_v49, %v2654_v16  ;;  %v4411_v9 = vpack.c.bf16 %v3942_v7, %v3941_v6  ;;  %v3944_v15 = vld [vmem:[%s5391_s4 + $0x38] sm:$0xff] }
 0xd9c   :  { %4515 = vpow2.f32 %v2674_v14  ;;  %v3943_v14 = vld [vmem:[%s5391_s4 + $0x30] sm:$0xff]  ;;  %s5410_s4 = smov 24  }
 0xd9d   :  { %v2676_v19 = vmul.f32 1.442695, %v2663_v17  ;;  %v2678_v20 = vmul.f32 1.442695, %v2664_v18  ;;  %v4415_v16 = vpack.c.bf16 %v3944_v15, %v3943_v14 }
 0xd9e   :  { %v2657_v24 = vpop.xlane.xlu0 %2656  ;;  %v2723_v25 = vpop.permute.xlu1 %2722 }
 0xd9f   :  { %4517 = vpow2.f32 %v2676_v19  ;;  %v2665_v26 = vsub.f32 %v2630_v54, %v2657_v24  ;;  %4283 = vmatpush3.msra.mxu0 %v2723_v25 }
 0xda0   :  { %4519 = vpow2.f32 %v2678_v20  ;;  %4292 = vmatprep.subr.mxu0 %v4648_v13 }
 0xda1   :  { %v4512_v28 = vpop.eup %4511  ;;  %v2680_v29 = vmul.f32 1.442695, %v2665_v26 }
 0xda2   :  { %v2799_v30 = vpop.permute.xlu0 %2798  ;;  %v2688_v31 = vsel %vm207_vm2, %v4512_v28, 0.0  ;;  %v2875_v42 = vpop.permute.xlu1 %2874 }
 0xda3   :  { %4521 = vpow2.f32 %v2680_v29  ;;  %2689 = vadd.xlane.f32.xlu1 %v2688_v31  ;;  %4288 = vmatpush3.msra.mxu1 %v2799_v30 }
 0xda4   :  { %4297 = vmatprep.subr.mxu1 %v4648_v13 }
 0xda5   :  { %v4514_v32 = vpop.eup %4513 }
 0xda6   :  { %v4516_v33 = vpop.eup %4515  ;;  %v2691_v34 = vsel %vm207_vm2, %v4514_v32, 0.0  ;;  %v2951_v43 = vpop.permute.xlu1 %2950 }
 0xda7   :  { %2692 = vadd.xlane.f32.xlu0 %v2691_v34  ;;  %v2694_v35 = vsel %vm207_vm2, %v4516_v33, 0.0  ;;  %v3027_v44 = vpop.permute.xlu0 %3026 }
 0xda8   :  { %2695 = vadd.xlane.f32.xlu1 %v2694_v35 }
 0xda9   :  { %v4518_v36 = vpop.eup %4517 }
 0xdaa   :  { %v4520_v37 = vpop.eup %4519  ;;  %v2697_v38 = vsel %vm207_vm2, %v4518_v36, 0.0  ;;  %v3103_v45 = vpop.permute.xlu1 %3102 }
 0xdab   :  { %2698 = vadd.xlane.f32.xlu0 %v2697_v38  ;;  %v2700_v39 = vsel %vm207_vm2, %v4520_v37, 0.0 }
 0xdac   :  { %2701 = vadd.xlane.f32.xlu1 %v2700_v39 }
 0xdad   :  { %v5233_v40 = vpop.eup %4521 }
 0xdae   :  { %v2703_v41 = vsel %vm207_vm2, %v5233_v40, 0.0 }
 0xdaf   :  { %2704 = vadd.xlane.f32.xlu0 %v2703_v41 }
 0xdbd   :  { %3254 = vrot.lane.b32.xlu1 %v5150_v27, %s4654_s17 }
 0xdc5   :  { %3178 = vrot.lane.b32.xlu0 %v5134_v23, %s4654_s17 }
 0xdd7   :  { %v2687_v46 = vpop.xlane.xlu0 %2686 }
 0xdd8   :  { %4523 = vrcp.f32 %v2687_v46 }
 0xddb   :  { %v2684_v21 = vpop.xlane.xlu1 %2683 }
 0xddc   :  { %4525 = vrcp.f32 %v2684_v21 }
 0xde2   :  { %v4524_v22 = vpop.eup %4523 }
 0xde3   :  { %v2715_v47 = vmul.f32 %v4524_v22, %v5218_v61 }
 0xde5   :  { %4290 = vmatmul.mubr.msk.f32.vlgmr.msra.gmra.mrb[32].mxu1 %vm207_vm2, %v2715_v47 }
 0xde6   :  { %v4526_v48 = vpop.eup %4525  ;;  %4298 = vmatpush3.msra.mxu1 %v2951_v43  ;;  %4299 = vmatprep.mubr.msk.f32.mxu1 %vm4651_vm1, %v4648_v13 }
 0xde7   :  { %v2714_v23 = vmul.f32 %v4526_v48, %v5222_v63  ;;  %4307 = vmatprep.subr.mxu1 %v4648_v13 }
 0xde9   :  { %4285 = vmatmul.mubr.msk.f32.vlgmr.msra.gmra.mrb[26].mxu0 %vm207_vm2, %v2714_v23 }
 0xdea   :  { %4293 = vmatpush3.msra.mxu0 %v2875_v42  ;;  %4294 = vmatprep.mubr.msk.f32.mxu0 %vm4651_vm1, %v4648_v13 }
 0xdeb   :  { %4302 = vmatprep.subr.mxu0 %v4648_v13 }
 0xe30   :  { %v2690_v27 = vpop.xlane.xlu1 %2689 }
 0xe31   :  { %4527 = vrcp.f32 %v2690_v27 }
 0xe34   :  { %v2693_v49 = vpop.xlane.xlu0 %2692 }
 0xe35   :  { %4529 = vrcp.f32 %v2693_v49  ;;  %v2696_v50 = vpop.xlane.xlu1 %2695 }
 0xe36   :  { %4531 = vrcp.f32 %v2696_v50 }
 0xe38   :  { %v2699_v51 = vpop.xlane.xlu0 %2698 }
 0xe39   :  { %4533 = vrcp.f32 %v2699_v51  ;;  %v2702_v52 = vpop.xlane.xlu1 %2701 }
 0xe3a   :  { %4535 = vrcp.f32 %v2702_v52 }
 0xe3b   :  { %v4528_v53 = vpop.eup %4527 }
 0xe3c   :  { %v2716_v54 = vmul.f32 %v4528_v53, %v4512_v28  ;;  %v2705_v55 = vpop.xlane.xlu0 %2704 }
 0xe3d   :  { %4537 = vrcp.f32 %v2705_v55  ;;  %v3255_v63 = vpop.permute.xlu1 %3254 }
 0xe3e   :  { %4295 = vmatmul.mubr.msk.f32.vlgmr.msra.gmra.mrb[28].mxu0 %vm207_vm2, %v2716_v54 }
 0xe3f   :  { %v4530_v56 = vpop.eup %4529  ;;  %4303 = vmatpush3.msra.mxu0 %v3027_v44  ;;  %4304 = vmatprep.mubr.msk.f32.mxu0 %vm4651_vm1, %v4648_v13 }
 0xe40   :  { %v4532_v10 = vpop.eup %4531  ;;  %v2717_v8 = vmul.f32 %v4530_v56, %v4514_v32  ;;  %4312 = vmatprep.subr.mxu0 %v4648_v13  ;;  %v3179_v58 = vpop.permute.xlu0 %3178 }
 0xe41   :  { %v2718_v57 = vmul.f32 %v4532_v10, %v4516_v33 }
 0xe42   :  { %4300 = vmatmul.mubr.msk.f32.vlgmr.msra.gmra.mrb[34].mxu1 %vm207_vm2, %v2717_v8 }
 0xe43   :  { %v4534_v59 = vpop.eup %4533  ;;  %4305 = vmatmul.mubr.msk.f32.vlgmr.msra.gmra.mrb[30].mxu0 %vm207_vm2, %v2718_v57  ;;  %4308 = vmatpush3.msra.mxu1 %v3103_v45  ;;  %v3946_v45 = vld [vmem:[%s5392_s5 + $0x1] ss:$0 sm:$0xff]  ;;  %v3954_v57 = vld [vmem:[%s5395_s8 + $0x28] sm:$0xff] }
 0xe44   :  { %v4536_v60 = vpop.eup %4535  ;;  %v2719_v61 = vmul.f32 %v4534_v59, %v4518_v36  ;;  %4313 = vmatpush3.msra.mxu0 %v3179_v58  ;;  %4309 = vmatprep.mubr.msk.f32.mxu1 %vm4651_vm1, %v4648_v13  ;;  %v3955_v59 = vld [vmem:[%s5395_s8 + $0x30] sm:$0xff] }
 0xe45   :  { %v2720_v62 = vmul.f32 %v4536_v60, %v4520_v37  ;;  %4314 = vmatprep.mubr.msk.f32.mxu0 %vm4651_vm1, %v4648_v13  ;;  %4317 = vmatprep.subr.mxu1 %v4648_v13  ;;  %v3956_v60 = vld [vmem:[%s5395_s8 + $0x38] sm:$0xff] }
 0xe46   :  { %4310 = vmatmul.mubr.msk.f32.vlgmr.msra.gmra.mrb[36].mxu1 %vm207_vm2, %v2719_v61  ;;  %4412 = vmatprep.subr.bf16.mxu0 %v4411_v9  ;;  %v4423_v61 = vpack.c.bf16 %v3956_v60, %v3955_v59  ;;  %v3749_v59 = vld [vmem:[#allocation7 + $0x28] sm:$0xff]  ;;  %v3751_v60 = vld [vmem:[#allocation7 + $0x38] sm:$0xff] }
 0xe47   :  { %v4538_v0 = vpop.eup %4537  ;;  %4315 = vmatmul.mubr.msk.f32.vlgmr.msra.gmra.mrb[32].mxu0 %vm207_vm2, %v2720_v62  ;;  %4318 = vmatpush3.msra.mxu1 %v3255_v63  ;;  %v3961_v62 = vld [vmem:[%s5397_s10 + $0x40] sm:$0xff]  ;;  %v3962_v63 = vld [vmem:[%s5397_s10 + $0x48] sm:$0xff] }
 0xe48   :  { %v2721_v1 = vmul.f32 %v4538_v0, %v5233_v40  ;;  %4319 = vmatprep.mubr.msk.f32.mxu1 %vm4651_vm1, %v4648_v13  ;;  %4414 = vmatpush3.bf16.msra.mxu0 %v4411_v9  ;;  %v3963_v0 = vld [vmem:[%s5397_s10 + $0x50] sm:$0xff] }
 0xe49   :  { %4416 = vmatprep.subr.bf16.mxu0 %v4415_v16 }
 0xe4a   :  { %4320 = vmatmul.mubr.msk.f32.vlgmr.msra.gmra.mrb[38].mxu1 %vm207_vm2, %v2721_v1  ;;  %v4427_v1 = vpack.c.bf16 %v3962_v63, %v3961_v62  ;;  %v3748_v62 = vld [vmem:[#allocation7 + $0x20] sm:$0xff]  ;;  %v3750_v63 = vld [vmem:[#allocation7 + $0x30] sm:$0xff] }
 0xe4c   :  { %4418 = vmatpush3.bf16.msra.mxu0 %v4415_v16 }
 0xe4d   :  { %4428 = vmatprep.subr.bf16.mxu0 %v4427_v1 }
 0xeb8   :  { %v2870_v2 = vpop.f32.mrb[32].mxu1 }
 0xeb9   :  { %v4291_v3 = vpop.f32.mrb[33].mxu1 }
 0xebc   :  { %v2794_v4 = vpop.f32.mrb[26].mxu0 }
 0xebd   :  { %v4286_v5 = vpop.f32.mrb[27].mxu0 }
 0xebe   :  { %v3966_v5 = vld [vmem:[%s5397_s10 + $0x68] sm:$0xff] }
 0xf11   :  { %v2946_v17 = vpop.f32.mrb[28].mxu0 }
 0xf12   :  { %3332 = vrot.lane.b32.xlu0 %v2946_v17, %s4644_s22  ;;  %v4296_v18 = vpop.f32.mrb[29].mxu0 }
 0xf15   :  { %v3022_v19 = vpop.f32.mrb[34].mxu1 }
 0xf16   :  { %v3098_v20 = vpop.f32.mrb[30].mxu0  ;;  %3334 = vrot.lane.b32.xlu1 %v3022_v19, %s4644_s22  ;;  %v4301_v24 = vpop.f32.mrb[35].mxu1  ;;  %v3951_v19 = vld [vmem:[%s5393_s6 + $0x1] ss:$0 sm:$0xff] }
 0xf17   :  { %3340 = vrot.lane.b32.xlu0 %v3098_v20, %s4647_s23  ;;  %v4306_v25 = vpop.f32.mrb[31].mxu0  ;;  %v3952_v24 = vld [vmem:[%s5394_s7 + $0x1] ss:$0 sm:$0xff] }
 0xf19   :  { %v3174_v26 = vpop.f32.mrb[36].mxu1 }
 0xf1a   :  { %v3250_v28 = vpop.f32.mrb[32].mxu0  ;;  %3342 = vrot.lane.b32.xlu1 %v3174_v26, %s4647_s23  ;;  %v4311_v29 = vpop.f32.mrb[37].mxu1 }
 0xf1b   :  { %3348 = vrot.lane.b32.xlu0 %v3250_v28, %s5410_s4  ;;  %v4316_v30 = vpop.f32.mrb[33].mxu0 }
 0xf1d   :  { %v3326_v31 = vpop.f32.mrb[38].mxu1 }
 0xf1e   :  { %3350 = vrot.lane.b32.xlu1 %v3326_v31, %s5410_s4  ;;  %v4321_v32 = vpop.f32.mrb[39].mxu1 }
 0xf1f   :  { %v3967_v32 = vld [vmem:[%s5397_s10 + $0x70] sm:$0xff] }
 0xf84   :  { %v3333_v33 = vpop.permute.xlu0 %3332 }
 0xf85   :  { %v3354_v36 = vsel %vm207_vm2, %v2794_v4, %v3333_v33  ;;  %v3965_v4 = vld [vmem:[%s5397_s10 + $0x60] sm:$0xff]  ;;  %v3968_v33 = vld [vmem:[%s5397_s10 + $0x78] sm:$0xff] }
 0xf86   :  { %v4435_v6 = vpack.c.bf16 %v3966_v5, %v3965_v4 }
 0xf88   :  { %v3335_v34 = vpop.permute.xlu1 %3334 }
 0xf89   :  { %v3341_v35 = vpop.permute.xlu0 %3340  ;;  %v3355_v41 = vsel %vm207_vm2, %v2870_v2, %v3335_v34  ;;  %v3964_v2 = vld [vmem:[%s5397_s10 + $0x58] sm:$0xff]  ;;  %v4439_v34 = vpack.c.bf16 %v3968_v33, %v3967_v32 }
 0xf8a   :  { %v3356_v38 = vsel %vm1536_vm3, %v3354_v36, %v3341_v35  ;;  %v4431_v3 = vpack.c.bf16 %v3964_v2, %v3963_v0  ;;  %v3958_v35 = vld [vmem:[%s5396_s9 + $0x1] ss:$0 sm:$0xff]  ;;  %v4449_v0 = vpack.c.bf16 %v3750_v63, %v3748_v62 }
 0xf8c   :  { %v3343_v37 = vpop.permute.xlu1 %3342 }
 0xf8d   :  { %v3349_v39 = vpop.permute.xlu0 %3348  ;;  %v3357_v42 = vsel %vm1536_vm3, %v3355_v41, %v3343_v37 }
 0xf8e   :  { %v3358_v40 = vsel %vm1539_vm4, %v3356_v38, %v3349_v39 }
 0xf8f   :  { %4330 = vmatprep.mubr.msk.f32.mxu0 %vm109_vm0, %v3358_v40 }
 0xf90   :  { %v3351_v43 = vpop.permute.xlu1 %3350 }
 0xf91   :  { %v3359_v44 = vsel %vm1539_vm4, %v3357_v42, %v3351_v43  ;;  %v3970_v42 = vld [vmem:[%s5398_s11 + $0x1] ss:$0 sm:$0xff] }
 0xf92   :  { %4331 = vmatmul.mubr.msk.f32.vlgmr.msra.gmra.mrb[34].mxu0 %vm109_vm0, %v3359_v44 }
 0xf93   :  { %4430 = vmatpush3.bf16.msra.mxu0 %v4427_v1 }
 0xf94   :  { %4432 = vmatprep.subr.bf16.mxu0 %v4431_v3 }
 0xf97   :  { %4434 = vmatpush3.bf16.msra.mxu0 %v4431_v3 }
 0xf98   :  { %4436 = vmatprep.subr.bf16.mxu0 %v4435_v6 }
 0xf9b   :  { %4438 = vmatpush3.bf16.msra.mxu0 %v4435_v6 }
 0xf9c   :  { %4440 = vmatprep.subr.bf16.mxu0 %v4439_v34 }
 0xf9f   :  { %4442 = vmatpush3.bf16.msra.mxu0 %v4439_v34 }
0x1065   :  { %v4332_v46 = vpop.f32.mrb[34].mxu0 }
0x1066   :  { %v3451_v21 = vadd.f32 %v4332_v46, %v3946_v45  ;;  %v3445_v22 = vpop.f32.mrb[35].mxu0 }
0x1067   :  { %v3446_v47 = vadd.f32 %v3946_v45, %v3445_v22 }
0x1068   :  { %v3455_v48 = vadd.f32 %v3451_v21, %v5095_v12 }
0x1069   :  { %v3454_v23 = vadd.f32 %v3446_v47, %v5093_v11  ;;  %v3953_v11 = vld [vmem:[%s5395_s8 + $0x20] sm:$0xff] }
0x106a   :  { %v3463_v27 = vsel %vm109_vm0, %v3455_v48, 0.0  ;;  %v4419_v58 = vpack.c.bf16 %v3954_v57, %v3953_v11  ;;  %v3744_v11 = vld [vmem:[#allocation7] sm:$0xff]  ;;  %v3746_v57 = vld [vmem:[#allocation7 + $0x10] sm:$0xff] }
0x106b   :  { %3464 = vadd.xlane.f32.xlu1 %v3463_v27  ;;  %v3460_v49 = vsel %vm109_vm0, %v3454_v23, 0.0 }
0x106c   :  { %3461 = vadd.xlane.f32.xlu0 %v3460_v49  ;;  %4420 = vmatprep.subr.bf16.mxu1 %v4419_v58 }
0x106d   :  { %4422 = vmatpush3.bf16.msra.mxu1 %v4419_v58  ;;  %v4445_v58 = vpack.c.bf16 %v3746_v57, %v3744_v11 }
0x106e   :  { %4424 = vmatprep.subr.bf16.mxu1 %v4423_v61 }
0x1071   :  { %4426 = vmatpush3.bf16.msra.mxu1 %v4423_v61  ;;  %v4447_v61 = vpack.c.bf16 %v3751_v60, %v3749_v59 }
0x10f8   :  { %v3465_v50 = vpop.xlane.xlu1 %3464 }
0x10f9   :  { %v3467_v51 = vmul.f32 0.03125, %v3465_v50  ;;  %v3462_v52 = vpop.xlane.xlu0 %3461 }
0x10fa   :  { %v3466_v53 = vmul.f32 0.03125, %v3462_v52 }
0x10fb   :  { %v3469_v54 = vsub.f32 %v3455_v48, %v3467_v51 }
0x10fc   :  { %v3468_v55 = vsub.f32 %v3454_v23, %v3466_v53 }
0x10fd   :  { %v3471_v8 = vmul.f32 %v3469_v54, %v3469_v54 }
0x10fe   :  { %v3470_v56 = vmul.f32 %v3468_v55, %v3468_v55 }
0x10ff   :  { %v3475_v12 = vsel %vm109_vm0, %v3471_v8, 0.0  ;;  %v3747_v8 = vld [vmem:[#allocation7 + $0x18] sm:$0xff] }
0x1100   :  { %v3472_v10 = vsel %vm109_vm0, %v3470_v56, 0.0 }
0x1101   :  { %3473 = vadd.xlane.f32.xlu0 %v3472_v10  ;;  %v3745_v10 = vld [vmem:[#allocation7 + $0x8] sm:$0xff] }
0x1105   :  { %3476 = vadd.xlane.f32.xlu0 %v3475_v12  ;;  %v4443_v12 = vpack.c.bf16 %v3747_v8, %v3745_v10 }
0x1107   :  { %4444 = vmatprep.subr.bf16.mxu1 %v4443_v12 }
0x118e   :  { %v3474_v7 = vpop.xlane.xlu0 %3473 }
0x118f   :  { %v3478_v9 = vmul.f32 0.03125, %v3474_v7 }
0x1191   :  { %v3480_v14 = vadd.f32 1e-05, %v3478_v9 }
0x1192   :  { %v3477_v15 = vpop.xlane.xlu0 %3476 }
0x1193   :  { %4539 = vrsqrt.f32 %v3480_v14  ;;  %v3479_v16 = vmul.f32 0.03125, %v3477_v15  ;;  %v3975_v14 = vld [vmem:[%s5399_s12 + $0x1] ss:$0 sm:$0xff] }
0x1195   :  { %v3481_v17 = vadd.f32 1e-05, %v3479_v16 }
0x1197   :  { %4541 = vrsqrt.f32 %v3481_v17  ;;  %v3976_v17 = vld [vmem:[%s5400_s13 + $0x1] ss:$0 sm:$0xff]  ;;  %s4656_s13 = smov [#allocation8]  }
0x1198   :  { %s3856_s30 = sshll.u32 %s4656_s13, 4  ;;  %s3857_s30 = int_to_ptr.vmem [resolvable:$true] %s3856_s30 }
0x1199   :  { %s4613_s1 = scalar_lea.vmem %s3857_s30, 512  ;;  %p4618_p11 = scmp.lt.s32.totalorder %s3857_s30, %s3857_s30 }
0x119a   :  { %p4614_p10 = scmp.ne.s32.totalorder %s3857_s30, %s4613_s1  ;;  %p4619_p12 = scmp.lt.s32.totalorder %s4613_s1, %s4613_s1 }
0x119c   :  { %p4620_p13 = por %p4619_p12, %p4618_p11 }
0x119d   :  { %v4540_v18 = vpop.eup %4539 }
0x119e   :  { %v3484_v20 = vmul.f32 %v4540_v18, %v3468_v55  ;;  %p4621_p0 = pnand %p4620_p13, %p4614_p10 }
0x11a0   :  { %v3492_v25 = vmul.f32 %v3951_v19, %v3484_v20 }
0x11a1   :  { %v4542_v26 = vpop.eup %4541 }
0x11a2   :  { %v3485_v28 = vmul.f32 %v4542_v26, %v3469_v54  ;;  %v3500_v29 = vadd.f32 %v3952_v24, %v3492_v25  ;;  %v3754_v25 = vlaneseq }
0x11a4   :  { %v3493_v30 = vmul.f32 %v3951_v19, %v3485_v28  ;;  %4341 = vmatprep.mubr.msk.f32.mxu1 %vm109_vm0, %v3500_v29  ;;  %v3755_v26 = vshrl.u32 %v3754_v25, 7 }
0x11a6   :  { %v3501_v31 = vadd.f32 %v3952_v24, %v3493_v30  ;;  %v3756_v28 = vsub.s32 0, %v3755_v26  ;;  %v3760_v30 = vsub.s32 1, %v3755_v26 }
0x11a8   :  { %4342 = vmatmul.mubr.msk.f32.vlgmr.msra.gmra.mrb[40].mxu1 %vm109_vm0, %v3501_v31 }
0x11a9   :  { %3834 = vmatprep.mubr.f32.mxu1 %v4648_v13  ;;  %4446 = vmatpush1.bf16.msra.mxu1 %v4445_v58 }
0x11aa   :  { %4448 = vmatprep.subr.bf16.mxu1 %v4447_v61 }
0x11ad   :  { %4450 = vmatpush1.bf16.msra.mxu1 %v4449_v0 }
0x127b   :  { %v4343_v36 = vpop.f32.mrb[40].mxu1 }
0x127c   :  { %v3593_v37 = vadd.f32 %v4343_v36, %v3958_v35  ;;  %v3587_v38 = vpop.f32.mrb[41].mxu1 }
0x127d   :  { %v3588_v39 = vadd.f32 %v3958_v35, %v3587_v38 }
0x127e   :  { %v3597_v41 = vmax.f32 %v3593_v37, 0.0 }
0x127f   :  { %v3596_v40 = vmax.f32 %v3588_v39, 0.0 }
0x1281   :  { %4360 = vmatprep.mubr.msk.f32.mxu0 %vm1790_vm5, %v3596_v40 }
0x1282   :  { %4361 = vmatmul.mubr.msk.f32.vlgmr.msra.gmra.mrb[36].mxu0 %vm1790_vm5, %v3597_v41 }
0x1355   :  { %v4362_v43 = vpop.f32.mrb[36].mxu0 }
0x1356   :  { %v3693_v44 = vadd.f32 %v4362_v43, %v3970_v42  ;;  %v3687_v45 = vpop.f32.mrb[37].mxu0 }
0x1357   :  { %v3688_v46 = vadd.f32 %v3970_v42, %v3687_v45 }
0x1358   :  { %v3697_v21 = vadd.f32 %v3693_v44, %v3501_v31 }
0x1359   :  { %v3696_v22 = vadd.f32 %v3688_v46, %v3500_v29  ;;  %v3752_v29 = vld [vmem:[%s5402_s15] sm:$0x3] }
0x135a   :  { %v3705_v47 = vsel %vm109_vm0, %v3697_v21, 0.0  ;;  %v3757_v31 = vrot.slane %v3752_v29, %v3756_v28  ;;  %v3761_v32 = vrot.slane %v3752_v29, %v3760_v30 }
0x135b   :  { %3706 = vadd.xlane.f32.xlu0 %v3705_v47  ;;  %v3702_v48 = vsel %vm109_vm0, %v3696_v22, 0.0 }
0x135c   :  { %3703 = vadd.xlane.f32.xlu1 %v3702_v48 }
0x13e8   :  { %v3707_v23 = vpop.xlane.xlu0 %3706 }
0x13e9   :  { %v3709_v27 = vmul.f32 0.03125, %v3707_v23  ;;  %v3704_v49 = vpop.xlane.xlu1 %3703 }
0x13ea   :  { %v3708_v50 = vmul.f32 0.03125, %v3704_v49 }
0x13eb   :  { %v3711_v51 = vsub.f32 %v3697_v21, %v3709_v27 }
0x13ec   :  { %v3710_v52 = vsub.f32 %v3696_v22, %v3708_v50 }
0x13ed   :  { %v3713_v53 = vmul.f32 %v3711_v51, %v3711_v51 }
0x13ee   :  { %v3712_v54 = vmul.f32 %v3710_v52, %v3710_v52 }
0x13ef   :  { %v3717_v55 = vsel %vm109_vm0, %v3713_v53, 0.0 }
0x13f0   :  { %3718 = vadd.xlane.f32.xlu0 %v3717_v55  ;;  %v3714_v56 = vsel %vm109_vm0, %v3712_v54, 0.0 }
0x13f1   :  { %3715 = vadd.xlane.f32.xlu1 %v3714_v56 }
0x147d   :  { %v3719_v1 = vpop.xlane.xlu0 %3718 }
0x147e   :  { %v3721_v2 = vmul.f32 0.03125, %v3719_v1  ;;  %v3716_v3 = vpop.xlane.xlu1 %3715 }
0x147f   :  { %v3720_v4 = vmul.f32 0.03125, %v3716_v3 }
0x1480   :  { %v3723_v5 = vadd.f32 1e-05, %v3721_v2 }
0x1481   :  { %v3722_v6 = vadd.f32 1e-05, %v3720_v4 }
0x1482   :  { %4543 = vrsqrt.f32 %v3723_v5 }
0x1483   :  { %4545 = vrsqrt.f32 %v3722_v6 }
0x148c   :  { %v4544_v7 = vpop.eup %4543 }
0x148d   :  { %v4546_v9 = vpop.eup %4545  ;;  %v3727_v16 = vmul.f32 %v4544_v7, %v3711_v51 }
0x148e   :  { %v3726_v15 = vmul.f32 %v4546_v9, %v3710_v52 }
0x148f   :  { %v3735_v20 = vmul.f32 %v3975_v14, %v3727_v16 }
0x1490   :  { %v3734_v18 = vmul.f32 %v3975_v14, %v3726_v15 }
0x1491   :  { %v3743_v24 = vadd.f32 %v3976_v17, %v3735_v20 }
0x1492   :  { %v3742_v19 = vadd.f32 %v3976_v17, %v3734_v18 }
0x1494   :  { %3977 = vmatmul.mubr.msk.f32.vlgmr.msra.gmra.mrb[42].mxu1 %vm109_vm0, %v3742_v19 }
0x1495   :  { %3840 = vmatprep.mubr.f32.mxu1 %v4648_v13 }
0x1498   :  { %3978 = vmatmul.mubr.msk.f32.gmra.mrb[44].mxu1 %vm109_vm0, %v3743_v24 }
0x1567   :  { %v3836_v33 = vpop.f32.mrb[42].mxu1 }
0x1568   :  { %v3837_v34 = vadd.f32 %v3836_v33, %v3757_v31  ;;  %v3838_v35 = vpop.f32.mrb[43].mxu1 }
0x1569   :  { %v3839_v36 = vadd.f32 %v3838_v35, %v3761_v32 }
0x156a   :  { %3847 = vst [vmem:[#allocation8] sm:$0xff] %v3837_v34 }
0x156b   :  { %3848 = vst [vmem:[#allocation8 + $0x8] sm:$0xff] %v3839_v36  ;;  %v3842_v13 = vpop.f32.mrb[44].mxu1 }
0x156c   :  { %v3843_v37 = vadd.f32 %v3842_v13, %v3757_v31  ;;  %v3844_v38 = vpop.f32.mrb[45].mxu1 }
0x156d   :  { %v3845_v39 = vadd.f32 %v3844_v38, %v3761_v32 }
0x156e   :  { %3849 = vst [vmem:[#allocation8 + $0x10] sm:$0xff] %v3843_v37 }
0x156f   :  { %3850 = vst [vmem:[#allocation8 + $0x18] sm:$0xff] %v3845_v39 }
0x1570   :  { %4624 = shalt.err (!%p4621_p0)
}
0x1571   :  { %s4625_s17 = scalar_lea.hbm %s5403_s16, 512 }
0x1572   :  { %p4626_p1 = scmp.ne.s32.totalorder %s5403_s16, %s4625_s17  ;;  %p4629_p2 = scmp.lt.u32.totalorder %s4625_s17, %s5403_s16 }
0x1574   :  { %p4631_p3 = pnand %p4629_p2, %p4626_p1 }
0x1576   :  { %4634 = shalt.err (!%p4631_p3)
}
0x1577   :  { %s5411_s22 = smov 256  }
0x1578   :  { %3862 = dma.vmem_to_hbm [thread:$0]  %s3857_s30, 512, %s5403_s16, [#allocation4], %s5411_s22, %s5411_s22, %s4647_s23  }
0x1579   :  { %4639 = dma.done.wait [#allocation4], 512  }
0x157a   :  { %4640 = vsyncadd [#allocation4], 4294966784 }
0x157b   :  { %3866 = vsyncpa [#allocation3], 1 }
0x157c   :  { %3867 = vsyncpa [#allocation6], 1 }
0x157d   :  { %3868 = vsyncpa [#allocation4], 1 }

</bundles_post_ra>
